<compile_context>
chip_gen: v5e
topology: v5e:2x2
jax: 0.10.0
libtpu: 0.0.40
codegen_flags: <defaults>
</compile_context>

<pallas_src>
import functools

import jax
import jax.numpy as jnp
import numpy as np
from jax.experimental import pallas as pl
from jax.experimental.pallas import tpu as pltpu

LN_EPS = 1e-5          # torch nn.LayerNorm default
PI = 3.1415926
R = 0.1
OFF_BLOCK = -1e30      # off-sequence entry of the squared-distance constant


# ---------------------------------------------------------------------------
# Fused kernel: conv1+LN1, conv2+LN2, conv3+LN3, softmaxes, Gaussian pooling
# ---------------------------------------------------------------------------
def _context_pooling_kernel(feats_ref, negsq_ref, mfirst_ref, mlast_ref, gones_ref,
                            w1_ref, b1_ref, g1_ref, be1_ref,
                            w2_ref, b2_ref, g2_ref, be2_ref,
                            w3_ref, b3_ref, g3_ref, be3_ref,
                            o_ref, *, bt, seq_len, mm_dtype):
    L = seq_len
    D = feats_ref.shape[-1]
    n = bt * L

    x0 = feats_ref[...].reshape(n, D)          # (N, D) f32; layout-free (L % 8 == 0 or bt == 1)
    mfirst = mfirst_ref[...]                   # (N, 1): 0.0 at rows where l == 0
    mlast = mlast_ref[...]                     # (N, 1): 0.0 at rows where l == L-1

    if bt > 1:
        gones = gones_ref[...]                 # (N, N) block-diagonal ones, f32

        def gsum(v):                           # each row gets its own sequence's total
            return jnp.dot(gones, v, preferred_element_type=jnp.float32)
    else:
        def gsum(v):                           # single sequence: plain full reduction
            return jnp.sum(v, axis=0, keepdims=True)

    def conv_ln(x, w_ref, b_ref, g_ref, be_ref):
        """Conv1d(k=3, stride=1, pad=1) + LayerNorm((C_out, L)); x is (N, C_in) f32."""
        # Shifted copies via the XLU roll; boundary rows (and cross-sequence
        # leakage when bt > 1) are zeroed by the precomputed masks.
        xm1 = pltpu.roll(x, 1, 0) * mfirst         # row r -> x[r-1]
        xp1 = pltpu.roll(x, n - 1, 0) * mlast      # row r -> x[r+1]   (shift -1 mod N)
        y = jnp.dot(xm1.astype(mm_dtype), w_ref[0], preferred_element_type=jnp.float32)
        y = y + jnp.dot(x.astype(mm_dtype), w_ref[1], preferred_element_type=jnp.float32)
        y = y + jnp.dot(xp1.astype(mm_dtype), w_ref[2], preferred_element_type=jnp.float32)
        y = y + b_ref[...]                         # (1, C_out) broadcast, f32

        # LayerNorm over each sequence's full (C_out, L) tile -- two-pass stats.
        inv_cnt = 1.0 / float(L * y.shape[1])
        mean = gsum(jnp.sum(y, axis=1, keepdims=True)) * inv_cnt
        yc = y - mean
        var = gsum(jnp.sum(yc * yc, axis=1, keepdims=True)) * inv_cnt
        y = yc * jax.lax.rsqrt(var + LN_EPS)
        y = y * g_ref[...] + be_ref[...]
        # nn.LeakyReLU(True): negative_slope == 1.0 -> identity -> dropped.
        return y

    y1 = conv_ln(x0, w1_ref, b1_ref, g1_ref, be1_ref)     # (N, 2D)
    y2 = conv_ln(y1, w2_ref, b2_ref, g2_ref, be2_ref)     # (N, 2D)
    y3 = conv_ln(y2, w3_ref, b3_ref, g3_ref, be3_ref)     # (N, 2): [s | w] logits

    # Per-sequence softmax over the L rows of each sequence.  Subtracting the
    # global column max is a per-sequence-constant shift (softmax-invariant);
    # overflow is impossible since the logits come out of a shared LN affine.
    m = jnp.max(y3, axis=0, keepdims=True)
    e = jnp.exp(y3 - m)
    sw = e / gsum(e)                                      # (N, 2) probabilities
    s_col = sw[:, 0:1]                                    # (N, 1)
    w_col = sw[:, 1:2]                                    # (N, 1)

    # Local Gaussian pooling.  Squared distances are a hoisted host constant;
    # off-sequence entries are -1e30 so exp() gives exact zeros.  The coeff /
    # row-max of the reference cancels exactly (max at place == center).
    std = (R * float(L)) * s_col                          # (N, 1)
    scale = 1.0 / (1e-5 + 2.0 * std * std)                # (N, 1)
    gauss = jnp.exp(negsq_ref[...] * scale)               # (N, N), f32
    weighted = w_col * x0                                 # (N, D), f32
    out = jnp.dot(gauss.astype(mm_dtype), weighted.astype(mm_dtype),
                  preferred_element_type=jnp.float32)     # (N, D)
    o_ref[...] = out.reshape(bt, L, D).astype(o_ref.dtype)


# ---------------------------------------------------------------------------
# Host wrapper
# ---------------------------------------------------------------------------
def _pick_block_batch(batch, seq_len):
    # Largest divisor of the batch with BT*L <= 128 (one MXU M-tile on every
    # generation), only when L % 8 == 0 so the flattening reshape is free.
    if seq_len % 8 != 0:
        return 1
    for cand in range(min(batch, max(1, 128 // seq_len)), 0, -1):
        if batch % cand == 0:
            return cand
    return 1


def context_pooling_forward(feats, params, *, matmul_dtype=jnp.bfloat16,
                            block_batch=None):
    B, L, D = feats.shape
    H = 2 * D
    bt = _pick_block_batch(B, L) if block_batch is None else int(block_batch)
    assert B % bt == 0 and (bt == 1 or L % 8 == 0)
    n = bt * L

    # ---- host-side constants (depend only on static shapes) ----------------
    li = np.arange(n) % L                        # position within its sequence
    gi = np.arange(n) // L                       # which sequence in the block
    same = gi[:, None] == gi[None, :]
    d2 = (li[None, :].astype(np.float32) - li[:, None].astype(np.float32)) ** 2
    negsq = np.where(same, -d2, OFF_BLOCK).astype(np.float32)        # (N, N)
    gones = (same.astype(np.float32) if bt > 1
             else np.ones((1, 1), np.float32))                       # (N, N) | dummy
    mfirst = (li != 0).astype(np.float32).reshape(n, 1)
    mlast = (li != L - 1).astype(np.float32).reshape(n, 1)

    def taps(w):       # (C_out, C_in, 3) -> (3, C_in, C_out), MXU dtype
        return jnp.transpose(w, (2, 1, 0)).astype(matmul_dtype)

    def tile_ln(p):    # (C_out, L) -> (BT*L, C_out), f32
        return jnp.tile(jnp.transpose(p), (bt, 1)).astype(jnp.float32)

    args = (
        feats,
        jnp.asarray(negsq), jnp.asarray(mfirst), jnp.asarray(mlast), jnp.asarray(gones),
        taps(params["w1"]), params["b1"].reshape(1, H).astype(jnp.float32),
        tile_ln(params["ln1_w"]), tile_ln(params["ln1_b"]),
        taps(params["w2"]), params["b2"].reshape(1, H).astype(jnp.float32),
        tile_ln(params["ln2_w"]), tile_ln(params["ln2_b"]),
        taps(params["w3"]), params["b3"].reshape(1, 2).astype(jnp.float32),
        tile_ln(params["ln3_w"]), tile_ln(params["ln3_b"]),
    )

    def const_spec(a):
        # TODO(synk): pipeline_mode=pl.Buffered(1) on these constant blocks would
        # halve resident weight VMEM on v7x; enable once confirmed on toolchain.
        if a.ndim == 2:
            return pl.BlockSpec(a.shape, lambda i: (0, 0))
        return pl.BlockSpec(a.shape, lambda i: (0, 0, 0))

    in_specs = [pl.BlockSpec((bt, L, D), lambda i: (i, 0, 0))]
    in_specs += [const_spec(a) for a in args[1:]]

    def nbytes(a):
        return int(np.prod(a.shape)) * np.dtype(a.dtype).itemsize

    const_bytes = sum(nbytes(a) for a in args[1:])
    io_bytes = 2 * n * D * 4                       # feats block + out block
    act_bytes = 6 * n * max(3 * H, n) * 4          # rough live-activation bound
    vmem_limit = int(min(64 << 20,
                         max(32 << 20, 2 * (const_bytes + io_bytes) + act_bytes)))

    kernel = functools.partial(_context_pooling_kernel, bt=bt, seq_len=L,
                               mm_dtype=matmul_dtype)
    return pl.pallas_call(
        kernel,
        out_shape=jax.ShapeDtypeStruct((B, L, D), jnp.float32),
        grid=(B // bt,),
        in_specs=in_specs,
        out_specs=pl.BlockSpec((bt, L, D), lambda i: (i, 0, 0)),
        compiler_params=pltpu.CompilerParams(
            # Batch axis is independent -> "parallel" feeds both v7x TensorCores
            # whenever B // bt >= 2; with tiny B we bias toward MXU-M fill instead.
            dimension_semantics=("parallel",),
            vmem_limit_bytes=vmem_limit),
    )(*args)


# ---------------------------------------------------------------------------
# Pure-JAX reference (faithful to the PyTorch module, incl. coeff & row-max)
# ---------------------------------------------------------------------------
def reference_forward(feats, params):
    def conv1d(x, w, b):
        L = x.shape[2]
        xpad = jnp.pad(x, ((0, 0), (0, 0), (1, 1)))
        y = sum(jnp.einsum("oc,bcl->bol", w[:, :, k], xpad[:, :, k:k + L])
                for k in range(3))
        return y + b[None, :, None]

    def ln(x, g, beta):
        m = jnp.mean(x, axis=(1, 2), keepdims=True)
        v = jnp.mean((x - m) ** 2, axis=(1, 2), keepdims=True)
        return (x - m) / jnp.sqrt(v + LN_EPS) * g[None] + beta[None]

    def lrelu(x):   # LeakyReLU(True) -> negative_slope == 1.0 (identity)
        return jnp.where(x >= 0, x, 1.0 * x)

    x = jnp.transpose(feats, (0, 2, 1))
    x = lrelu(ln(conv1d(x, params["w1"], params["b1"]), params["ln1_w"], params["ln1_b"]))
    x = lrelu(ln(conv1d(x, params["w2"], params["b2"]), params["ln2_w"], params["ln2_b"]))
    x = lrelu(ln(conv1d(x, params["w3"], params["b3"]), params["ln3_w"], params["ln3_b"]))

    B, L, D = feats.shape
    s = jax.nn.softmax(x[:, 0, :], axis=1)
    w = jax.nn.softmax(x[:, 1, :], axis=1)
    place = jnp.arange(L, dtype=jnp.float32)
    outs = []
    for i in range(L):
        std = (R * L * s[:, i])[:, None]
        ret = (2.0 * PI) ** (-0.5) / std * jnp.exp(
            -(place[None, :] - i) ** 2 / (1e-5 + 2.0 * std ** 2))
        ret = ret / jnp.max(ret, axis=1, keepdims=True)
        w_ = (ret * w)[:, :, None]
        outs.append(jnp.sum(w_ * feats, axis=1, keepdims=True))
    return jnp.concatenate(outs, axis=1)


# ---------------------------------------------------------------------------
def init_params(key, in_dim, seq_len):
    H = in_dim * 2
    ks = jax.random.split(key, 6)

    def conv_init(kw, kb, c_out, c_in):
        bound = 1.0 / np.sqrt(c_in * 3)
        w = jax.random.uniform(kw, (c_out, c_in, 3), jnp.float32, -bound, bound)
        b = jax.random.uniform(kb, (c_out,), jnp.float32, -bound, bound)
        return w, b

    w1, b1 = conv_init(ks[0], ks[1], H, in_dim)
    w2, b2 = conv_init(ks[2], ks[3], H, H)
    w3, b3 = conv_init(ks[4], ks[5], 2, H)
    return {
        "w1": w1, "b1": b1,
        "ln1_w": jnp.ones((H, seq_len), jnp.float32),
        "ln1_b": jnp.zeros((H, seq_len), jnp.float32),
        "w2": w2, "b2": b2,
        "ln2_w": jnp.ones((H, seq_len), jnp.float32),
        "ln2_b": jnp.zeros((H, seq_len), jnp.float32),
        "w3": w3, "b3": b3,
        "ln3_w": jnp.ones((2, seq_len), jnp.float32),
        "ln3_b": jnp.zeros((2, seq_len), jnp.float32),
    }


if __name__ == "__main__":
    B, L, D = 2, 8, 32                                   # batch, seq_len, in_dim
    key = jax.random.PRNGKey(0)
    k_feats, k_params = jax.random.split(key)
    feats = jax.random.normal(k_feats, (B, L, D), jnp.float32)
    params = init_params(k_params, D, L)

    ref = np.asarray(reference_forward(feats, params))
    fwd = jax.jit(context_pooling_forward,
                  static_argnames=("matmul_dtype", "block_batch"))

    # f32 MXU path: strict 1e-3 parity with the f32 reference.
    out_f32 = jax.block_until_ready(fwd(feats, params, matmul_dtype=jnp.float32))
    assert out_f32.shape == (B, L, D)
    assert np.allclose(np.asarray(out_f32), ref, rtol=1e-3, atol=1e-3), \
        "Pallas f32 output mismatch vs JAX reference"

    # bf16 MXU path (the fast default): ~2-4x MXU throughput, ~1e-2 accuracy cost.
    out_bf16 = jax.block_until_ready(fwd(feats, params))
    assert out_bf16.shape == (B, L, D)
    assert np.allclose(np.asarray(out_bf16), ref, rtol=4e-2, atol=4e-2), \
        "Pallas bf16 output mismatch vs JAX reference"

    print("KERNEL_OK")
</pallas_src>

<mosaic_0001>
module attributes {stable_mosaic.version = 11 : i64} {
  func.func @_context_pooling_kernel(%arg0: i32, %arg1: memref<2x8x32xf32, #tpu.memory_space<vmem>>, %arg2: memref<16x16xf32, #tpu.memory_space<vmem>>, %arg3: memref<16x1xf32, #tpu.memory_space<vmem>>, %arg4: memref<16x1xf32, #tpu.memory_space<vmem>>, %arg5: memref<16x16xf32, #tpu.memory_space<vmem>>, %arg6: memref<3x32x64xf32, #tpu.memory_space<vmem>>, %arg7: memref<1x64xf32, #tpu.memory_space<vmem>>, %arg8: memref<16x64xf32, #tpu.memory_space<vmem>>, %arg9: memref<16x64xf32, #tpu.memory_space<vmem>>, %arg10: memref<3x64x64xf32, #tpu.memory_space<vmem>>, %arg11: memref<1x64xf32, #tpu.memory_space<vmem>>, %arg12: memref<16x64xf32, #tpu.memory_space<vmem>>, %arg13: memref<16x64xf32, #tpu.memory_space<vmem>>, %arg14: memref<3x64x2xf32, #tpu.memory_space<vmem>>, %arg15: memref<1x2xf32, #tpu.memory_space<vmem>>, %arg16: memref<16x2xf32, #tpu.memory_space<vmem>>, %arg17: memref<16x2xf32, #tpu.memory_space<vmem>>, %arg18: memref<2x8x32xf32, #tpu.memory_space<vmem>>) attributes {dimension_semantics = [#tpu.dimension_semantics<parallel>], iteration_bounds = array<i64: 1>, scalar_prefetch = 0 : i64, scratch_operands = 0 : i64, tpu.core_type = #tpu.core_type<tc>, window_params = [{transform_indices = @transform_0, window_bounds = array<i64: 2, 8, 32>}, {pipeline_mode = #tpu.pipeline_mode<synchronous>, transform_indices = @transform_1, window_bounds = array<i64: 16, 16>}, {pipeline_mode = #tpu.pipeline_mode<synchronous>, transform_indices = @transform_2, window_bounds = array<i64: 16, 1>}, {pipeline_mode = #tpu.pipeline_mode<synchronous>, transform_indices = @transform_3, window_bounds = array<i64: 16, 1>}, {pipeline_mode = #tpu.pipeline_mode<synchronous>, transform_indices = @transform_4, window_bounds = array<i64: 16, 16>}, {pipeline_mode = #tpu.pipeline_mode<synchronous>, transform_indices = @transform_5, window_bounds = array<i64: 3, 32, 64>}, {pipeline_mode = #tpu.pipeline_mode<synchronous>, transform_indices = @transform_6, window_bounds = array<i64: 1, 64>}, {pipeline_mode = #tpu.pipeline_mode<synchronous>, transform_indices = @transform_7, window_bounds = array<i64: 16, 64>}, {pipeline_mode = #tpu.pipeline_mode<synchronous>, transform_indices = @transform_8, window_bounds = array<i64: 16, 64>}, {pipeline_mode = #tpu.pipeline_mode<synchronous>, transform_indices = @transform_9, window_bounds = array<i64: 3, 64, 64>}, {pipeline_mode = #tpu.pipeline_mode<synchronous>, transform_indices = @transform_10, window_bounds = array<i64: 1, 64>}, {pipeline_mode = #tpu.pipeline_mode<synchronous>, transform_indices = @transform_11, window_bounds = array<i64: 16, 64>}, {pipeline_mode = #tpu.pipeline_mode<synchronous>, transform_indices = @transform_12, window_bounds = array<i64: 16, 64>}, {pipeline_mode = #tpu.pipeline_mode<synchronous>, transform_indices = @transform_13, window_bounds = array<i64: 3, 64, 2>}, {pipeline_mode = #tpu.pipeline_mode<synchronous>, transform_indices = @transform_14, window_bounds = array<i64: 1, 2>}, {pipeline_mode = #tpu.pipeline_mode<synchronous>, transform_indices = @transform_15, window_bounds = array<i64: 16, 2>}, {pipeline_mode = #tpu.pipeline_mode<synchronous>, transform_indices = @transform_16, window_bounds = array<i64: 16, 2>}, {transform_indices = @transform_17, window_bounds = array<i64: 2, 8, 32>}]} {
    %c0 = arith.constant 0 : index
    %c0_0 = arith.constant 0 : index
    %c0_1 = arith.constant 0 : index
    %0 = vector.load %arg1[%c0, %c0_0, %c0_1] : memref<2x8x32xf32, #tpu.memory_space<vmem>>, vector<2x8x32xf32>
    %1 = vector.shape_cast %0 : vector<2x8x32xf32> to vector<16x32xf32>
    %c0_2 = arith.constant 0 : index
    %c0_3 = arith.constant 0 : index
    %2 = vector.load %arg3[%c0_2, %c0_3] : memref<16x1xf32, #tpu.memory_space<vmem>>, vector<16x1xf32>
    %c0_4 = arith.constant 0 : index
    %c0_5 = arith.constant 0 : index
    %3 = vector.load %arg4[%c0_4, %c0_5] : memref<16x1xf32, #tpu.memory_space<vmem>>, vector<16x1xf32>
    %c0_6 = arith.constant 0 : index
    %c0_7 = arith.constant 0 : index
    %4 = vector.load %arg5[%c0_6, %c0_7] : memref<16x16xf32, #tpu.memory_space<vmem>>, vector<16x16xf32>
    %c1_i32 = arith.constant 1 : i32
    %5 = tpu.dynamic_rotate %1 by %c1_i32 dim 0 : vector<16x32xf32>, i32 -> vector<16x32xf32>
    %6 = vector.broadcast %2 : vector<16x1xf32> to vector<16x32xf32>
    %7 = arith.mulf %5, %6 : vector<16x32xf32>
    %c15_i32 = arith.constant 15 : i32
    %8 = tpu.dynamic_rotate %1 by %c15_i32 dim 0 : vector<16x32xf32>, i32 -> vector<16x32xf32>
    %9 = vector.broadcast %3 : vector<16x1xf32> to vector<16x32xf32>
    %10 = arith.mulf %8, %9 : vector<16x32xf32>
    %c0_8 = arith.constant 0 : index
    %c0_9 = arith.constant 0 : index
    %c0_10 = arith.constant 0 : index
    %11 = vector.load %arg6[%c0_8, %c0_9, %c0_10] : memref<3x32x64xf32, #tpu.memory_space<vmem>>, vector<1x32x64xf32>
    %12 = vector.shape_cast %11 : vector<1x32x64xf32> to vector<32x64xf32>
    %cst = arith.constant dense<0.000000e+00> : vector<16x64xf32>
    %13 = tpu.matmul %7, %12, %cst {dimension_numbers = #tpu.dot_dimension_numbers<[1], [0], [0], [1], [0, 0, 1, 1], [], []>} : vector<16x32xf32>, vector<32x64xf32>, vector<16x64xf32> -> vector<16x64xf32>
    %c1 = arith.constant 1 : index
    %c0_11 = arith.constant 0 : index
    %c0_12 = arith.constant 0 : index
    %14 = vector.load %arg6[%c1, %c0_11, %c0_12] : memref<3x32x64xf32, #tpu.memory_space<vmem>>, vector<1x32x64xf32>
    %15 = vector.shape_cast %14 : vector<1x32x64xf32> to vector<32x64xf32>
    %cst_13 = arith.constant dense<0.000000e+00> : vector<16x64xf32>
    %16 = tpu.matmul %1, %15, %cst_13 {dimension_numbers = #tpu.dot_dimension_numbers<[1], [0], [0], [1], [0, 0, 1, 1], [], []>} : vector<16x32xf32>, vector<32x64xf32>, vector<16x64xf32> -> vector<16x64xf32>
    %17 = arith.addf %13, %16 : vector<16x64xf32>
    %c2 = arith.constant 2 : index
    %c0_14 = arith.constant 0 : index
    %c0_15 = arith.constant 0 : index
    %18 = vector.load %arg6[%c2, %c0_14, %c0_15] : memref<3x32x64xf32, #tpu.memory_space<vmem>>, vector<1x32x64xf32>
    %19 = vector.shape_cast %18 : vector<1x32x64xf32> to vector<32x64xf32>
    %cst_16 = arith.constant dense<0.000000e+00> : vector<16x64xf32>
    %20 = tpu.matmul %10, %19, %cst_16 {dimension_numbers = #tpu.dot_dimension_numbers<[1], [0], [0], [1], [0, 0, 1, 1], [], []>} : vector<16x32xf32>, vector<32x64xf32>, vector<16x64xf32> -> vector<16x64xf32>
    %21 = arith.addf %17, %20 : vector<16x64xf32>
    %c0_17 = arith.constant 0 : index
    %c0_18 = arith.constant 0 : index
    %22 = vector.load %arg7[%c0_17, %c0_18] : memref<1x64xf32, #tpu.memory_space<vmem>>, vector<1x64xf32>
    %23 = vector.broadcast %22 : vector<1x64xf32> to vector<16x64xf32>
    %24 = arith.addf %21, %23 : vector<16x64xf32>
    %cst_19 = arith.constant dense<0.000000e+00> : vector<16xf32>
    %25 = vector.multi_reduction <add>, %24, %cst_19 [1] : vector<16x64xf32> to vector<16xf32>
    %26 = vector.shape_cast %25 : vector<16xf32> to vector<16x1xf32>
    %cst_20 = arith.constant dense<0.000000e+00> : vector<16x1xf32>
    %27 = tpu.matmul %4, %26, %cst_20 {dimension_numbers = #tpu.dot_dimension_numbers<[1], [0], [0], [1], [0, 0, 1, 1], [], []>} : vector<16x16xf32>, vector<16x1xf32>, vector<16x1xf32> -> vector<16x1xf32>
    %cst_21 = arith.constant 0.001953125 : f32
    %28 = vector.broadcast %cst_21 : f32 to vector<16x1xf32>
    %29 = arith.mulf %27, %28 : vector<16x1xf32>
    %30 = vector.broadcast %29 : vector<16x1xf32> to vector<16x64xf32>
    %31 = arith.subf %24, %30 : vector<16x64xf32>
    %32 = arith.mulf %31, %31 : vector<16x64xf32>
    %cst_22 = arith.constant dense<0.000000e+00> : vector<16xf32>
    %33 = vector.multi_reduction <add>, %32, %cst_22 [1] : vector<16x64xf32> to vector<16xf32>
    %34 = vector.shape_cast %33 : vector<16xf32> to vector<16x1xf32>
    %cst_23 = arith.constant dense<0.000000e+00> : vector<16x1xf32>
    %35 = tpu.matmul %4, %34, %cst_23 {dimension_numbers = #tpu.dot_dimension_numbers<[1], [0], [0], [1], [0, 0, 1, 1], [], []>} : vector<16x16xf32>, vector<16x1xf32>, vector<16x1xf32> -> vector<16x1xf32>
    %cst_24 = arith.constant 0.001953125 : f32
    %36 = vector.broadcast %cst_24 : f32 to vector<16x1xf32>
    %37 = arith.mulf %35, %36 : vector<16x1xf32>
    %cst_25 = arith.constant 9.99999974E-6 : f32
    %38 = vector.broadcast %cst_25 : f32 to vector<16x1xf32>
    %39 = arith.addf %37, %38 : vector<16x1xf32>
    %40 = math.rsqrt %39 : vector<16x1xf32>
    %41 = vector.broadcast %40 : vector<16x1xf32> to vector<16x64xf32>
    %42 = arith.mulf %31, %41 : vector<16x64xf32>
    %c0_26 = arith.constant 0 : index
    %c0_27 = arith.constant 0 : index
    %43 = vector.load %arg8[%c0_26, %c0_27] : memref<16x64xf32, #tpu.memory_space<vmem>>, vector<16x64xf32>
    %44 = arith.mulf %42, %43 : vector<16x64xf32>
    %c0_28 = arith.constant 0 : index
    %c0_29 = arith.constant 0 : index
    %45 = vector.load %arg9[%c0_28, %c0_29] : memref<16x64xf32, #tpu.memory_space<vmem>>, vector<16x64xf32>
    %46 = arith.addf %44, %45 : vector<16x64xf32>
    %c1_i32_30 = arith.constant 1 : i32
    %47 = tpu.dynamic_rotate %46 by %c1_i32_30 dim 0 : vector<16x64xf32>, i32 -> vector<16x64xf32>
    %48 = vector.broadcast %2 : vector<16x1xf32> to vector<16x64xf32>
    %49 = arith.mulf %47, %48 : vector<16x64xf32>
    %c15_i32_31 = arith.constant 15 : i32
    %50 = tpu.dynamic_rotate %46 by %c15_i32_31 dim 0 : vector<16x64xf32>, i32 -> vector<16x64xf32>
    %51 = vector.broadcast %3 : vector<16x1xf32> to vector<16x64xf32>
    %52 = arith.mulf %50, %51 : vector<16x64xf32>
    %c0_32 = arith.constant 0 : index
    %c0_33 = arith.constant 0 : index
    %c0_34 = arith.constant 0 : index
    %53 = vector.load %arg10[%c0_32, %c0_33, %c0_34] : memref<3x64x64xf32, #tpu.memory_space<vmem>>, vector<1x64x64xf32>
    %54 = vector.shape_cast %53 : vector<1x64x64xf32> to vector<64x64xf32>
    %cst_35 = arith.constant dense<0.000000e+00> : vector<16x64xf32>
    %55 = tpu.matmul %49, %54, %cst_35 {dimension_numbers = #tpu.dot_dimension_numbers<[1], [0], [0], [1], [0, 0, 1, 1], [], []>} : vector<16x64xf32>, vector<64x64xf32>, vector<16x64xf32> -> vector<16x64xf32>
    %c1_36 = arith.constant 1 : index
    %c0_37 = arith.constant 0 : index
    %c0_38 = arith.constant 0 : index
    %56 = vector.load %arg10[%c1_36, %c0_37, %c0_38] : memref<3x64x64xf32, #tpu.memory_space<vmem>>, vector<1x64x64xf32>
    %57 = vector.shape_cast %56 : vector<1x64x64xf32> to vector<64x64xf32>
    %cst_39 = arith.constant dense<0.000000e+00> : vector<16x64xf32>
    %58 = tpu.matmul %46, %57, %cst_39 {dimension_numbers = #tpu.dot_dimension_numbers<[1], [0], [0], [1], [0, 0, 1, 1], [], []>} : vector<16x64xf32>, vector<64x64xf32>, vector<16x64xf32> -> vector<16x64xf32>
    %59 = arith.addf %55, %58 : vector<16x64xf32>
    %c2_40 = arith.constant 2 : index
    %c0_41 = arith.constant 0 : index
    %c0_42 = arith.constant 0 : index
    %60 = vector.load %arg10[%c2_40, %c0_41, %c0_42] : memref<3x64x64xf32, #tpu.memory_space<vmem>>, vector<1x64x64xf32>
    %61 = vector.shape_cast %60 : vector<1x64x64xf32> to vector<64x64xf32>
    %cst_43 = arith.constant dense<0.000000e+00> : vector<16x64xf32>
    %62 = tpu.matmul %52, %61, %cst_43 {dimension_numbers = #tpu.dot_dimension_numbers<[1], [0], [0], [1], [0, 0, 1, 1], [], []>} : vector<16x64xf32>, vector<64x64xf32>, vector<16x64xf32> -> vector<16x64xf32>
    %63 = arith.addf %59, %62 : vector<16x64xf32>
    %c0_44 = arith.constant 0 : index
    %c0_45 = arith.constant 0 : index
    %64 = vector.load %arg11[%c0_44, %c0_45] : memref<1x64xf32, #tpu.memory_space<vmem>>, vector<1x64xf32>
    %65 = vector.broadcast %64 : vector<1x64xf32> to vector<16x64xf32>
    %66 = arith.addf %63, %65 : vector<16x64xf32>
    %cst_46 = arith.constant dense<0.000000e+00> : vector<16xf32>
    %67 = vector.multi_reduction <add>, %66, %cst_46 [1] : vector<16x64xf32> to vector<16xf32>
    %68 = vector.shape_cast %67 : vector<16xf32> to vector<16x1xf32>
    %cst_47 = arith.constant dense<0.000000e+00> : vector<16x1xf32>
    %69 = tpu.matmul %4, %68, %cst_47 {dimension_numbers = #tpu.dot_dimension_numbers<[1], [0], [0], [1], [0, 0, 1, 1], [], []>} : vector<16x16xf32>, vector<16x1xf32>, vector<16x1xf32> -> vector<16x1xf32>
    %cst_48 = arith.constant 0.001953125 : f32
    %70 = vector.broadcast %cst_48 : f32 to vector<16x1xf32>
    %71 = arith.mulf %69, %70 : vector<16x1xf32>
    %72 = vector.broadcast %71 : vector<16x1xf32> to vector<16x64xf32>
    %73 = arith.subf %66, %72 : vector<16x64xf32>
    %74 = arith.mulf %73, %73 : vector<16x64xf32>
    %cst_49 = arith.constant dense<0.000000e+00> : vector<16xf32>
    %75 = vector.multi_reduction <add>, %74, %cst_49 [1] : vector<16x64xf32> to vector<16xf32>
    %76 = vector.shape_cast %75 : vector<16xf32> to vector<16x1xf32>
    %cst_50 = arith.constant dense<0.000000e+00> : vector<16x1xf32>
    %77 = tpu.matmul %4, %76, %cst_50 {dimension_numbers = #tpu.dot_dimension_numbers<[1], [0], [0], [1], [0, 0, 1, 1], [], []>} : vector<16x16xf32>, vector<16x1xf32>, vector<16x1xf32> -> vector<16x1xf32>
    %cst_51 = arith.constant 0.001953125 : f32
    %78 = vector.broadcast %cst_51 : f32 to vector<16x1xf32>
    %79 = arith.mulf %77, %78 : vector<16x1xf32>
    %cst_52 = arith.constant 9.99999974E-6 : f32
    %80 = vector.broadcast %cst_52 : f32 to vector<16x1xf32>
    %81 = arith.addf %79, %80 : vector<16x1xf32>
    %82 = math.rsqrt %81 : vector<16x1xf32>
    %83 = vector.broadcast %82 : vector<16x1xf32> to vector<16x64xf32>
    %84 = arith.mulf %73, %83 : vector<16x64xf32>
    %c0_53 = arith.constant 0 : index
    %c0_54 = arith.constant 0 : index
    %85 = vector.load %arg12[%c0_53, %c0_54] : memref<16x64xf32, #tpu.memory_space<vmem>>, vector<16x64xf32>
    %86 = arith.mulf %84, %85 : vector<16x64xf32>
    %c0_55 = arith.constant 0 : index
    %c0_56 = arith.constant 0 : index
    %87 = vector.load %arg13[%c0_55, %c0_56] : memref<16x64xf32, #tpu.memory_space<vmem>>, vector<16x64xf32>
    %88 = arith.addf %86, %87 : vector<16x64xf32>
    %c1_i32_57 = arith.constant 1 : i32
    %89 = tpu.dynamic_rotate %88 by %c1_i32_57 dim 0 : vector<16x64xf32>, i32 -> vector<16x64xf32>
    %90 = vector.broadcast %2 : vector<16x1xf32> to vector<16x64xf32>
    %91 = arith.mulf %89, %90 : vector<16x64xf32>
    %c15_i32_58 = arith.constant 15 : i32
    %92 = tpu.dynamic_rotate %88 by %c15_i32_58 dim 0 : vector<16x64xf32>, i32 -> vector<16x64xf32>
    %93 = vector.broadcast %3 : vector<16x1xf32> to vector<16x64xf32>
    %94 = arith.mulf %92, %93 : vector<16x64xf32>
    %c0_59 = arith.constant 0 : index
    %c0_60 = arith.constant 0 : index
    %c0_61 = arith.constant 0 : index
    %95 = vector.load %arg14[%c0_59, %c0_60, %c0_61] : memref<3x64x2xf32, #tpu.memory_space<vmem>>, vector<1x64x2xf32>
    %96 = vector.shape_cast %95 : vector<1x64x2xf32> to vector<64x2xf32>
    %cst_62 = arith.constant dense<0.000000e+00> : vector<16x2xf32>
    %97 = tpu.matmul %91, %96, %cst_62 {dimension_numbers = #tpu.dot_dimension_numbers<[1], [0], [0], [1], [0, 0, 1, 1], [], []>} : vector<16x64xf32>, vector<64x2xf32>, vector<16x2xf32> -> vector<16x2xf32>
    %c1_63 = arith.constant 1 : index
    %c0_64 = arith.constant 0 : index
    %c0_65 = arith.constant 0 : index
    %98 = vector.load %arg14[%c1_63, %c0_64, %c0_65] : memref<3x64x2xf32, #tpu.memory_space<vmem>>, vector<1x64x2xf32>
    %99 = vector.shape_cast %98 : vector<1x64x2xf32> to vector<64x2xf32>
    %cst_66 = arith.constant dense<0.000000e+00> : vector<16x2xf32>
    %100 = tpu.matmul %88, %99, %cst_66 {dimension_numbers = #tpu.dot_dimension_numbers<[1], [0], [0], [1], [0, 0, 1, 1], [], []>} : vector<16x64xf32>, vector<64x2xf32>, vector<16x2xf32> -> vector<16x2xf32>
    %101 = arith.addf %97, %100 : vector<16x2xf32>
    %c2_67 = arith.constant 2 : index
    %c0_68 = arith.constant 0 : index
    %c0_69 = arith.constant 0 : index
    %102 = vector.load %arg14[%c2_67, %c0_68, %c0_69] : memref<3x64x2xf32, #tpu.memory_space<vmem>>, vector<1x64x2xf32>
    %103 = vector.shape_cast %102 : vector<1x64x2xf32> to vector<64x2xf32>
    %cst_70 = arith.constant dense<0.000000e+00> : vector<16x2xf32>
    %104 = tpu.matmul %94, %103, %cst_70 {dimension_numbers = #tpu.dot_dimension_numbers<[1], [0], [0], [1], [0, 0, 1, 1], [], []>} : vector<16x64xf32>, vector<64x2xf32>, vector<16x2xf32> -> vector<16x2xf32>
    %105 = arith.addf %101, %104 : vector<16x2xf32>
    %c0_71 = arith.constant 0 : index
    %c0_72 = arith.constant 0 : index
    %106 = vector.load %arg15[%c0_71, %c0_72] : memref<1x2xf32, #tpu.memory_space<vmem>>, vector<1x2xf32>
    %107 = vector.broadcast %106 : vector<1x2xf32> to vector<16x2xf32>
    %108 = arith.addf %105, %107 : vector<16x2xf32>
    %cst_73 = arith.constant dense<0.000000e+00> : vector<16xf32>
    %109 = vector.multi_reduction <add>, %108, %cst_73 [1] : vector<16x2xf32> to vector<16xf32>
    %110 = vector.shape_cast %109 : vector<16xf32> to vector<16x1xf32>
    %cst_74 = arith.constant dense<0.000000e+00> : vector<16x1xf32>
    %111 = tpu.matmul %4, %110, %cst_74 {dimension_numbers = #tpu.dot_dimension_numbers<[1], [0], [0], [1], [0, 0, 1, 1], [], []>} : vector<16x16xf32>, vector<16x1xf32>, vector<16x1xf32> -> vector<16x1xf32>
    %cst_75 = arith.constant 6.250000e-02 : f32
    %112 = vector.broadcast %cst_75 : f32 to vector<16x1xf32>
    %113 = arith.mulf %111, %112 : vector<16x1xf32>
    %114 = vector.broadcast %113 : vector<16x1xf32> to vector<16x2xf32>
    %115 = arith.subf %108, %114 : vector<16x2xf32>
    %116 = arith.mulf %115, %115 : vector<16x2xf32>
    %cst_76 = arith.constant dense<0.000000e+00> : vector<16xf32>
    %117 = vector.multi_reduction <add>, %116, %cst_76 [1] : vector<16x2xf32> to vector<16xf32>
    %118 = vector.shape_cast %117 : vector<16xf32> to vector<16x1xf32>
    %cst_77 = arith.constant dense<0.000000e+00> : vector<16x1xf32>
    %119 = tpu.matmul %4, %118, %cst_77 {dimension_numbers = #tpu.dot_dimension_numbers<[1], [0], [0], [1], [0, 0, 1, 1], [], []>} : vector<16x16xf32>, vector<16x1xf32>, vector<16x1xf32> -> vector<16x1xf32>
    %cst_78 = arith.constant 6.250000e-02 : f32
    %120 = vector.broadcast %cst_78 : f32 to vector<16x1xf32>
    %121 = arith.mulf %119, %120 : vector<16x1xf32>
    %cst_79 = arith.constant 9.99999974E-6 : f32
    %122 = vector.broadcast %cst_79 : f32 to vector<16x1xf32>
    %123 = arith.addf %121, %122 : vector<16x1xf32>
    %124 = math.rsqrt %123 : vector<16x1xf32>
    %125 = vector.broadcast %124 : vector<16x1xf32> to vector<16x2xf32>
    %126 = arith.mulf %115, %125 : vector<16x2xf32>
    %c0_80 = arith.constant 0 : index
    %c0_81 = arith.constant 0 : index
    %127 = vector.load %arg16[%c0_80, %c0_81] : memref<16x2xf32, #tpu.memory_space<vmem>>, vector<16x2xf32>
    %128 = arith.mulf %126, %127 : vector<16x2xf32>
    %c0_82 = arith.constant 0 : index
    %c0_83 = arith.constant 0 : index
    %129 = vector.load %arg17[%c0_82, %c0_83] : memref<16x2xf32, #tpu.memory_space<vmem>>, vector<16x2xf32>
    %130 = arith.addf %128, %129 : vector<16x2xf32>
    %cst_84 = arith.constant dense<0xFF800000> : vector<2xf32>
    %131 = vector.multi_reduction <maximumf>, %130, %cst_84 [0] : vector<16x2xf32> to vector<2xf32>
    %132 = vector.shape_cast %131 : vector<2xf32> to vector<1x2xf32>
    %133 = vector.broadcast %132 : vector<1x2xf32> to vector<16x2xf32>
    %134 = arith.subf %130, %133 : vector<16x2xf32>
    %135 = math.exp %134 : vector<16x2xf32>
    %cst_85 = arith.constant dense<0.000000e+00> : vector<16x2xf32>
    %136 = tpu.matmul %4, %135, %cst_85 {dimension_numbers = #tpu.dot_dimension_numbers<[1], [0], [0], [1], [0, 0, 1, 1], [], []>} : vector<16x16xf32>, vector<16x2xf32>, vector<16x2xf32> -> vector<16x2xf32>
    %137 = arith.divf %135, %136 : vector<16x2xf32>
    %138 = vector.extract_strided_slice %137 {offsets = [0, 0], sizes = [16, 1], strides = [1, 1]} : vector<16x2xf32> to vector<16x1xf32>
    %139 = vector.extract_strided_slice %137 {offsets = [0, 1], sizes = [16, 1], strides = [1, 1]} : vector<16x2xf32> to vector<16x1xf32>
    %cst_86 = arith.constant 8.000000e-01 : f32
    %140 = vector.broadcast %cst_86 : f32 to vector<16x1xf32>
    %141 = arith.mulf %140, %138 : vector<16x1xf32>
    %cst_87 = arith.constant 2.000000e+00 : f32
    %142 = vector.broadcast %cst_87 : f32 to vector<16x1xf32>
    %143 = arith.mulf %142, %141 : vector<16x1xf32>
    %144 = arith.mulf %143, %141 : vector<16x1xf32>
    %cst_88 = arith.constant 9.99999974E-6 : f32
    %145 = vector.broadcast %cst_88 : f32 to vector<16x1xf32>
    %146 = arith.addf %145, %144 : vector<16x1xf32>
    %cst_89 = arith.constant 1.000000e+00 : f32
    %147 = vector.broadcast %cst_89 : f32 to vector<16x1xf32>
    %148 = arith.divf %147, %146 : vector<16x1xf32>
    %c0_90 = arith.constant 0 : index
    %c0_91 = arith.constant 0 : index
    %149 = vector.load %arg2[%c0_90, %c0_91] : memref<16x16xf32, #tpu.memory_space<vmem>>, vector<16x16xf32>
    %150 = vector.broadcast %148 : vector<16x1xf32> to vector<16x16xf32>
    %151 = arith.mulf %149, %150 : vector<16x16xf32>
    %152 = math.exp %151 : vector<16x16xf32>
    %153 = vector.broadcast %139 : vector<16x1xf32> to vector<16x32xf32>
    %154 = arith.mulf %153, %1 : vector<16x32xf32>
    %cst_92 = arith.constant dense<0.000000e+00> : vector<16x32xf32>
    %155 = tpu.matmul %152, %154, %cst_92 {dimension_numbers = #tpu.dot_dimension_numbers<[1], [0], [0], [1], [0, 0, 1, 1], [], []>} : vector<16x16xf32>, vector<16x32xf32>, vector<16x32xf32> -> vector<16x32xf32>
    %156 = vector.shape_cast %155 : vector<16x32xf32> to vector<2x8x32xf32>
    %c0_93 = arith.constant 0 : index
    %c0_94 = arith.constant 0 : index
    %c0_95 = arith.constant 0 : index
    %157 = vector.load %arg18[%c0_93, %c0_94, %c0_95] : memref<2x8x32xf32, #tpu.memory_space<vmem>>, vector<2x8x32xf32>
    tpu.vector_store %arg18[%c0_93, %c0_94, %c0_95], %156 {strides = array<i32>} : memref<2x8x32xf32, #tpu.memory_space<vmem>>, vector<2x8x32xf32>,
    return
  }
  func.func @transform_0(%arg0: i32) -> (i32, i32, i32) {
    %c0_i32 = arith.constant 0 : i32
    %c0_i32_0 = arith.constant 0 : i32
    %c0_i32_1 = arith.constant 0 : i32
    return %arg0, %c0_i32, %c0_i32_0 : i32, i32, i32
  }
  func.func @transform_1(%arg0: i32) -> (i32, i32) {
    %c0_i32 = arith.constant 0 : i32
    %c0_i32_0 = arith.constant 0 : i32
    %c0_i32_1 = arith.constant 0 : i32
    return %c0_i32, %c0_i32_0 : i32, i32
  }
  func.func @transform_2(%arg0: i32) -> (i32, i32) {
    %c0_i32 = arith.constant 0 : i32
    %c0_i32_0 = arith.constant 0 : i32
    %c0_i32_1 = arith.constant 0 : i32
    return %c0_i32, %c0_i32_0 : i32, i32
  }
  func.func @transform_3(%arg0: i32) -> (i32, i32) {
    %c0_i32 = arith.constant 0 : i32
    %c0_i32_0 = arith.constant 0 : i32
    %c0_i32_1 = arith.constant 0 : i32
    return %c0_i32, %c0_i32_0 : i32, i32
  }
  func.func @transform_4(%arg0: i32) -> (i32, i32) {
    %c0_i32 = arith.constant 0 : i32
    %c0_i32_0 = arith.constant 0 : i32
    %c0_i32_1 = arith.constant 0 : i32
    return %c0_i32, %c0_i32_0 : i32, i32
  }
  func.func @transform_5(%arg0: i32) -> (i32, i32, i32) {
    %c0_i32 = arith.constant 0 : i32
    %c0_i32_0 = arith.constant 0 : i32
    %c0_i32_1 = arith.constant 0 : i32
    %c0_i32_2 = arith.constant 0 : i32
    return %c0_i32, %c0_i32_0, %c0_i32_1 : i32, i32, i32
  }
  func.func @transform_6(%arg0: i32) -> (i32, i32) {
    %c0_i32 = arith.constant 0 : i32
    %c0_i32_0 = arith.constant 0 : i32
    %c0_i32_1 = arith.constant 0 : i32
    return %c0_i32, %c0_i32_0 : i32, i32
  }
  func.func @transform_7(%arg0: i32) -> (i32, i32) {
    %c0_i32 = arith.constant 0 : i32
    %c0_i32_0 = arith.constant 0 : i32
    %c0_i32_1 = arith.constant 0 : i32
    return %c0_i32, %c0_i32_0 : i32, i32
  }
  func.func @transform_8(%arg0: i32) -> (i32, i32) {
    %c0_i32 = arith.constant 0 : i32
    %c0_i32_0 = arith.constant 0 : i32
    %c0_i32_1 = arith.constant 0 : i32
    return %c0_i32, %c0_i32_0 : i32, i32
  }
  func.func @transform_9(%arg0: i32) -> (i32, i32, i32) {
    %c0_i32 = arith.constant 0 : i32
    %c0_i32_0 = arith.constant 0 : i32
    %c0_i32_1 = arith.constant 0 : i32
    %c0_i32_2 = arith.constant 0 : i32
    return %c0_i32, %c0_i32_0, %c0_i32_1 : i32, i32, i32
  }
  func.func @transform_10(%arg0: i32) -> (i32, i32) {
    %c0_i32 = arith.constant 0 : i32
    %c0_i32_0 = arith.constant 0 : i32
    %c0_i32_1 = arith.constant 0 : i32
    return %c0_i32, %c0_i32_0 : i32, i32
  }
  func.func @transform_11(%arg0: i32) -> (i32, i32) {
    %c0_i32 = arith.constant 0 : i32
    %c0_i32_0 = arith.constant 0 : i32
    %c0_i32_1 = arith.constant 0 : i32
    return %c0_i32, %c0_i32_0 : i32, i32
  }
  func.func @transform_12(%arg0: i32) -> (i32, i32) {
    %c0_i32 = arith.constant 0 : i32
    %c0_i32_0 = arith.constant 0 : i32
    %c0_i32_1 = arith.constant 0 : i32
    return %c0_i32, %c0_i32_0 : i32, i32
  }
  func.func @transform_13(%arg0: i32) -> (i32, i32, i32) {
    %c0_i32 = arith.constant 0 : i32
    %c0_i32_0 = arith.constant 0 : i32
    %c0_i32_1 = arith.constant 0 : i32
    %c0_i32_2 = arith.constant 0 : i32
    return %c0_i32, %c0_i32_0, %c0_i32_1 : i32, i32, i32
  }
  func.func @transform_14(%arg0: i32) -> (i32, i32) {
    %c0_i32 = arith.constant 0 : i32
    %c0_i32_0 = arith.constant 0 : i32
    %c0_i32_1 = arith.constant 0 : i32
    return %c0_i32, %c0_i32_0 : i32, i32
  }
  func.func @transform_15(%arg0: i32) -> (i32, i32) {
    %c0_i32 = arith.constant 0 : i32
    %c0_i32_0 = arith.constant 0 : i32
    %c0_i32_1 = arith.constant 0 : i32
    return %c0_i32, %c0_i32_0 : i32, i32
  }
  func.func @transform_16(%arg0: i32) -> (i32, i32) {
    %c0_i32 = arith.constant 0 : i32
    %c0_i32_0 = arith.constant 0 : i32
    %c0_i32_1 = arith.constant 0 : i32
    return %c0_i32, %c0_i32_0 : i32, i32
  }
  func.func @transform_17(%arg0: i32) -> (i32, i32, i32) {
    %c0_i32 = arith.constant 0 : i32
    %c0_i32_0 = arith.constant 0 : i32
    %c0_i32_1 = arith.constant 0 : i32
    return %arg0, %c0_i32, %c0_i32_0 : i32, i32, i32
  }
}

</mosaic_0001>

<bundles_post_ra>
// kernel: context_pooling_forward.1
= control target key start
LH: loop header
LB: loop body
LE: loop exit
PB: predicated region body
PF: predicated region fallthrough
CT: control target
= control target key end

     0   :  { %s1671_s0 = inlined_call_operand.vmem [shape: f32[2,8,32], index: 0, kind: input, shape index: {}]   ;;  %s1672_s1 = inlined_call_operand.vmem [shape: f32[16,16], index: 1, kind: input, shape index: {}]   ;;  %s1673_s2 = inlined_call_operand.vmem [shape: f32[16,1], index: 2, kind: input, shape index: {}]   ;;  %s1674_s3 = inlined_call_operand.vmem [shape: f32[16,1], index: 3, kind: input, shape index: {}]   ;;  %s1675_s4 = inlined_call_operand.vmem [shape: f32[16,16], index: 4, kind: input, shape index: {}]   ;;  %s1676_s5 = inlined_call_operand.vmem [shape: f32[3,32,64], index: 5, kind: input, shape index: {}]   ;;  %s1677_s6 = inlined_call_operand.vmem [shape: f32[1,64], index: 6, kind: input, shape index: {}]   ;;  %s1678_s7 = inlined_call_operand.vmem [shape: f32[16,64], index: 7, kind: input, shape index: {}]   ;;  %s1679_s8 = inlined_call_operand.vmem [shape: f32[16,64], index: 8, kind: input, shape index: {}]   ;;  %s1680_s9 = inlined_call_operand.vmem [shape: f32[3,64,64], index: 9, kind: input, shape index: {}]   ;;  %s1681_s10 = inlined_call_operand.vmem [shape: f32[1,64], index: 10, kind: input, shape index: {}]   ;;  %s1682_s11 = inlined_call_operand.vmem [shape: f32[16,64], index: 11, kind: input, shape index: {}]   ;;  %s1683_s12 = inlined_call_operand.vmem [shape: f32[16,64], index: 12, kind: input, shape index: {}]   ;;  %s1684_s13 = inlined_call_operand.vmem [shape: f32[3,64,2], index: 13, kind: input, shape index: {}]   ;;  %s1685_s14 = inlined_call_operand.vmem [shape: f32[1,2], index: 14, kind: input, shape index: {}]   ;;  %s1686_s15 = inlined_call_operand.vmem [shape: f32[16,2], index: 15, kind: input, shape index: {}]   ;;  %s1687_s16 = inlined_call_operand.vmem [shape: f32[16,2], index: 16, kind: input, shape index: {}]   ;;  %s1688_s17 = inlined_call_operand.hbm [shape: f32[2,8,32], index: 17, kind: output, shape index: {}]  }
   0x1   :  { %1691 = sst [smem:[#allocation5_spill]] %s1671_s0 }
   0x2   :  { %1692 = sst [smem:[#allocation6_spill]] %s1672_s1 }
   0x3   :  { %v62_v0 = vld [vmem:[%s1674_s3 + $0x8] sm:$0xff]  ;;  %v61_v1 = vld [vmem:[%s1674_s3] sm:$0xff]  ;;  %v1176_v2 = vmov 0   ;;  %v1036_v3 = vld [vmem:[%s1676_s5 + $0x58] sm:$0xff] }
   0x4   :  { %1113 = vset.pattern.permute.xlu1 %v1176_v2  ;;  %1112 = vset.pattern.permute.xlu0 %v1176_v2  ;;  %v1035_v4 = vld [vmem:[%s1676_s5 + $0x50] sm:$0xff] }
   0x5   :  { %96 = vperm.xlu1 %1113, %v62_v0   ;;  %91 = vperm.xlu0 %1112, %v61_v1  }
   0x6   :  { %192 = vmatpush.msra.mxu2 %v1036_v3  ;;  %1114 = vset.pattern.permute.xlu2 %v1176_v2 }
   0x7   :  { %22 = vsyncpa [#allocation3], 0  ;;  %v1034_v5 = vld [vmem:[%s1676_s5 + $0x48] sm:$0xff]  ;;  %v59_v7 = vld [vmem:[%s1673_s2] sm:$0xff]  ;;  %s1693_s25 = sld [smem:[#allocation5_spill]]  ;;  %vm110_vm0 = vcmask 261120   ;;  %v67_v19 = vlaneseq }
   0x8   :  { %193 = vmatpush.msra.mxu2 %v1035_v4  ;;  %v60_v6 = vld [vmem:[%s1673_s2 + $0x8] sm:$0xff]  ;;  %v1033_v8 = vld [vmem:[%s1676_s5 + $0x40] sm:$0xff]  ;;  %v1028_v9 = vld [vmem:[%s1676_s5 + $0x38] sm:$0xff]  ;;  %vm211_vm3 = vcmask 523264   ;;  %vm218_vm4 = vcmask 130048   ;;  %s1694_s2 = sld [smem:[#allocation6_spill]] }
   0x9   :  { %v104_v10 = vld [vmem:[%s1676_s5 + $0x18] sm:$0xff]  ;;  %v1027_v11 = vld [vmem:[%s1676_s5 + $0x30] sm:$0xff]  ;;  %129 = vmatpush.msra.mxu0 %v1028_v9  ;;  %v1026_v13 = vld [vmem:[%s1676_s5 + $0x28] sm:$0xff]  ;;  %v1327_v20 = vshrl.u32 %v67_v19, 7  ;;  %s1179_s30 = smov 128   ;;  %s1180_s18 = smov 8  }
   0xa   :  { %194 = vmatpush.msra.mxu2 %v1034_v5  ;;  %158 = vmatpush.msra.mxu1 %v104_v10  ;;  %v103_v12 = vld [vmem:[%s1676_s5 + $0x10] sm:$0xff]  ;;  %v102_v14 = vld [vmem:[%s1676_s5 + $0x8] sm:$0xff]  ;;  %v1025_v15 = vld [vmem:[%s1676_s5 + $0x20] sm:$0xff] }
   0xb   :  { %130 = vmatpush.msra.mxu0 %v1027_v11  ;;  %v101_v16 = vld [vmem:[%s1676_s5] sm:$0xff]  ;;  %vm86_vm1 = vcmp.lt.s32.totalorder %v1327_v20, 7  ;;  %vm69_vm2 = vcmp.lt.s32.totalorder %v1327_v20, 1  ;;  %v1370_v55 = vld [vmem:[%s1675_s4 + $0x8] sm:$0xff] }
   0xc   :  { %195 = vmatpush.msra.mxu2 %v1033_v8  ;;  %159 = vmatpush.msra.mxu1 %v103_v12  ;;  %v1117_v46 = vld [vmem:[%s1677_s6] ss:$0 sm:$0xff] }
   0xd   :  { %79 = vperm.xlu1 %1113, %v60_v6   ;;  %74 = vperm.xlu0 %1112, %v59_v7   ;;  %v57_v17 = vld [vmem:[%s1693_s25] sm:$0xff]  ;;  %v58_v18 = vld [vmem:[%s1693_s25 + $0x8] sm:$0xff] }
   0xe   :  { %131 = vmatpush.msra.mxu0 %v1026_v13  ;;  %160 = vmatpush.msra.mxu1 %v102_v14  ;;  %v84_v21 = vrot.slane %v57_v17, 1  ;;  %v85_v22 = vrot.slane %v58_v18, 1  ;;  %v65_v26 = vrot.slane %v57_v17, 7  ;;  %v66_v27 = vrot.slane %v58_v18, 7  ;;  %v1363_v53 = vld [vmem:[%s1675_s4] sm:$0xff]  ;;  %s1013_s4 = sshll.u32 %s1688_s17, 4  ;;  %s1014_s4 = int_to_ptr.hbm [resolvable:$true] %s1013_s4 }
  0x10   :  { %132 = vmatpush.msra.mxu0 %v1025_v15  ;;  %161 = vmatpush.msra.mxu1 %v101_v16  ;;  %v87_v23 = vsel %vm86_vm1, %v84_v21, %v85_v22  ;;  %v88_v29 = vsel %vm86_vm1, %v85_v22, %v84_v21  ;;  %v71_v30 = vsel %vm69_vm2, %v66_v27, %v65_v26 }
  0x11   :  { %1029 = vmatmul.msk.f32.vlgmr.msra.gmra.mxu0 %vm110_vm0, %v57_v17  ;;  %v70_v35 = vsel %vm69_vm2, %v65_v26, %v66_v27 }
  0x19   :  { %1030 = vmatmul.msk.f32.gmra.mxu0 %vm110_vm0, %v58_v18 }
  0x77   :  { %v1332_v24 = vpop.permute.xlu0 %91  ;;  %v1337_v28 = vpop.permute.xlu1 %96 }
  0x78   :  { %v99_v25 = vmul.f32 %v1332_v24, %v87_v23  ;;  %v100_v31 = vmul.f32 %v1337_v28, %v88_v29  ;;  %v1050_v29 = vld [vmem:[%s1680_s9 + $0x78] sm:$0xff] }
  0x79   :  { %380 = vmatpush.msrb.mxu0 %v1050_v29 }
  0x7a   :  { %1037 = vmatmul.msk.f32.vlgmr.msra.gmra.mxu2 %vm110_vm0, %v99_v25 }
  0x7f   :  { %v1344_v32 = vpop.permute.xlu0 %74  ;;  %v1349_v34 = vpop.permute.xlu1 %79 }
  0x80   :  { %v82_v33 = vmul.f32 %v1344_v32, %v71_v30  ;;  %v83_v36 = vmul.f32 %v1349_v34, %v70_v35  ;;  %v1049_v30 = vld [vmem:[%s1680_s9 + $0x70] sm:$0xff]  ;;  %v1048_v35 = vld [vmem:[%s1680_s9 + $0x68] sm:$0xff] }
  0x81   :  { %381 = vmatpush.msrb.mxu0 %v1049_v30 }
  0x82   :  { %1031 = vmatmul.msk.f32.vlgmr.msra.gmra.mxu1 %vm110_vm0, %v82_v33  ;;  %1038 = vmatmul.msk.f32.gmra.mxu2 %vm110_vm0, %v100_v31  ;;  %v356_v31 = vld [vmem:[%s1680_s9 + $0x38] sm:$0xff] }
  0x83   :  { %v1062_v33 = vld [vmem:[%s1680_s9 + $0xb8] sm:$0xff]  ;;  %409 = vmatpush.msrb.mxu1 %v356_v31  ;;  %382 = vmatpush.msrb.mxu0 %v1048_v35 }
  0x84   :  { %447 = vmatpush.msrb.mxu2 %v1062_v33 }
  0x8a   :  { %1032 = vmatmul.msk.f32.gmra.mxu1 %vm110_vm0, %v83_v36  ;;  %v355_v36 = vld [vmem:[%s1680_s9 + $0x30] sm:$0xff] }
  0x8b   :  { %410 = vmatpush.msrb.mxu1 %v355_v36 }
  0x8e   :  { %v134_v37 = vpop.f32.mrf.mxu0 }
  0x96   :  { %v137_v40 = vpop.f32.mrf.mxu0 }
  0xfd   :  { %v197_v38 = vpop.f32.mrf.mxu2 }
  0xff   :  { %v163_v39 = vpop.f32.mrf.mxu1 }
 0x100   :  { %v164_v44 = vadd.f32 %v163_v39, %v134_v37  ;;  %v1061_v37 = vld [vmem:[%s1680_s9 + $0xb0] sm:$0xff]  ;;  %v1046_v39 = vld [vmem:[%s1680_s9 + $0x58] sm:$0xff] }
 0x101   :  { %448 = vmatpush.msrb.mxu2 %v1061_v37 }
 0x102   :  { %v203_v48 = vadd.f32 %v197_v38, %v164_v44  ;;  %v1047_v38 = vld [vmem:[%s1680_s9 + $0x60] sm:$0xff] }
 0x103   :  { %383 = vmatpush.msrb.mxu0 %v1047_v38  ;;  %v1059_v44 = vld [vmem:[%s1680_s9 + $0xa0] sm:$0xff] }
 0x104   :  { %v209_v50 = vadd.f32 %v1117_v46, %v203_v48  ;;  %v1043_v48 = vld [vmem:[%s1680_s9 + $0x40] sm:$0xff] }
 0x105   :  { %v200_v43 = vpop.f32.mrf.mxu2  ;;  %384 = vmatpush.msrb.mxu0 %v1046_v39 }
 0x106   :  { %v212_v51 = vsel %vm211_vm3, %v209_v50, 0.0 }
 0x107   :  { %v166_v41 = vpop.f32.mrf.mxu1 }
 0x108   :  { %v167_v42 = vadd.f32 %v166_v41, %v137_v40  ;;  %v354_v40 = vld [vmem:[%s1680_s9 + $0x28] sm:$0xff] }
 0x109   :  { %v1060_v41 = vld [vmem:[%s1680_s9 + $0xa8] sm:$0xff]  ;;  %411 = vmatpush.msrb.mxu1 %v354_v40 }
 0x10a   :  { %v204_v45 = vadd.f32 %v200_v43, %v167_v42  ;;  %449 = vmatpush.msrb.mxu2 %v1060_v41  ;;  %v1045_v42 = vld [vmem:[%s1680_s9 + $0x50] sm:$0xff]  ;;  %v353_v43 = vld [vmem:[%s1680_s9 + $0x20] sm:$0xff] }
 0x10b   :  { %385 = vmatpush.msrb.mxu0 %v1045_v42  ;;  %412 = vmatpush.msrb.mxu1 %v353_v43 }
 0x10c   :  { %v210_v47 = vadd.f32 %v1117_v46, %v204_v45  ;;  %450 = vmatpush.msrb.mxu2 %v1059_v44  ;;  %v1044_v45 = vld [vmem:[%s1680_s9 + $0x48] sm:$0xff]  ;;  %v352_v46 = vld [vmem:[%s1680_s9 + $0x18] sm:$0xff] }
 0x10d   :  { %386 = vmatpush.msrb.mxu0 %v1044_v45  ;;  %413 = vmatpush.msrb.mxu1 %v352_v46 }
 0x10e   :  { %v215_v49 = vsel %vm211_vm3, %v210_v47, 0.0 }
 0x10f   :  { %216 = vadd.xlane.f32.xlu2 %v215_v49  ;;  %387 = vmatpush.msrb.mxu0 %v1043_v48  ;;  %v351_v49 = vld [vmem:[%s1680_s9 + $0x10] sm:$0xff] }
 0x110   :  { %414 = vmatpush.msrb.mxu1 %v351_v49 }
 0x117   :  { %213 = vadd.xlane.f32.xlu2 %v212_v51  ;;  %v350_v51 = vld [vmem:[%s1680_s9 + $0x8] sm:$0xff] }
 0x118   :  { %415 = vmatpush.msrb.mxu1 %v350_v51 }
 0x182   :  { %v217_v52 = vpop.xlane.xlu2 %216 }
 0x183   :  { %239 = vmatpush.msra.mxu3 %v217_v52  ;;  %v1056_v52 = vld [vmem:[%s1680_s9 + $0x88] sm:$0xff] }
 0x18a   :  { %v214_v54 = vpop.xlane.xlu2 %213 }
 0x18b   :  { %240 = vmatpush.msra.mxu3 %v214_v54  ;;  %v349_v54 = vld [vmem:[%s1680_s9] sm:$0xff] }
 0x18c   :  { %1039 = vmatmul.msk.f32.vlgmr.msra.gmra.mxu3 %vm218_vm4, %v1363_v53  ;;  %416 = vmatpush.msrb.mxu1 %v349_v54  ;;  %v1076_v54 = vld [vmem:[%s1684_s13 + $0x78] sm:$0xff] }
 0x18e   :  { %631 = vmatpush.msra.mxu1 %v1076_v54 }
 0x194   :  { %1040 = vmatmul.msk.f32.gmra.mxu3 %vm218_vm4, %v1370_v55 }
 0x20f   :  { %v242_v56 = vpop.f32.mrf.mxu3 }
 0x210   :  { %v248_v57 = vmul.f32 0.001953125, %v242_v56  ;;  %v1055_v56 = vld [vmem:[%s1680_s9 + $0x80] sm:$0xff] }
 0x212   :  { %252 = vperm.xlu1 %1113, %v248_v57  }
 0x217   :  { %v245_v58 = vpop.f32.mrf.mxu3 }
 0x218   :  { %v249_v59 = vmul.f32 0.001953125, %v245_v58 }
 0x21a   :  { %257 = vperm.xlu0 %1112, %v249_v59   ;;  %v330_v59 = vld [vmem:[%s1678_s7 + $0x8] sm:$0xff] }
 0x284   :  { %v253_v60 = vpop.permute.xlu1 %252 }
 0x285   :  { %v1374_v61 = vsub.f32 %v209_v50, %v253_v60  ;;  %v1057_v50 = vld [vmem:[%s1680_s9 + $0x90] sm:$0xff] }
 0x287   :  { %v262_v62 = vmul.f32 %v1374_v61, %v1374_v61 }
 0x289   :  { %v264_v63 = vsel %vm211_vm3, %v262_v62, 0.0  ;;  %v334_v62 = vld [vmem:[%s1679_s8 + $0x8] sm:$0xff] }
 0x28a   :  { %265 = vadd.xlane.f32.xlu0 %v264_v63  ;;  %v329_v63 = vld [vmem:[%s1678_s7] sm:$0xff] }
 0x28c   :  { %v258_v0 = vpop.permute.xlu0 %257 }
 0x28d   :  { %v1379_v1 = vsub.f32 %v210_v47, %v258_v0  ;;  %v1058_v47 = vld [vmem:[%s1680_s9 + $0x98] sm:$0xff] }
 0x28e   :  { %451 = vmatpush.msrb.mxu2 %v1058_v47 }
 0x28f   :  { %v263_v2 = vmul.f32 %v1379_v1, %v1379_v1 }
 0x290   :  { %452 = vmatpush.msrb.mxu2 %v1057_v50 }
 0x291   :  { %v267_v3 = vsel %vm211_vm3, %v263_v2, 0.0 }
 0x292   :  { %268 = vadd.xlane.f32.xlu2 %v267_v3  ;;  %453 = vmatpush.msrb.mxu2 %v1056_v52 }
 0x294   :  { %454 = vmatpush.msrb.mxu2 %v1055_v56  ;;  %v1075_v56 = vld [vmem:[%s1684_s13 + $0x70] sm:$0xff] }
 0x295   :  { %632 = vmatpush.msra.mxu1 %v1075_v56 }
 0x2fd   :  { %v266_v5 = vpop.xlane.xlu0 %265 }
 0x305   :  { %v269_v4 = vpop.xlane.xlu2 %268 }
 0x306   :  { %284 = vmatpush.msrb.mxu3 %v269_v4 }
 0x308   :  { %285 = vmatpush.msrb.mxu3 %v266_v5 }
 0x309   :  { %1041 = vmatmul.msk.f32.vlgmr.msrb.gmra.mxu3 %vm218_vm4, %v1363_v53 }
 0x311   :  { %1042 = vmatmul.msk.f32.gmra.mxu3 %vm218_vm4, %v1370_v55 }
 0x38c   :  { %v287_v6 = vpop.f32.mrf.mxu3 }
 0x38d   :  { %v293_v7 = vmul.f32 0.001953125, %v287_v6 }
 0x38f   :  { %v295_v8 = vadd.f32 1e-05, %v293_v7 }
 0x391   :  { %1120 = vrsqrt.f32 %v295_v8  ;;  %vm303_vm6 = vweird.f32 %v295_v8 }
 0x394   :  { %v290_v9 = vpop.f32.mrf.mxu3 }
 0x395   :  { %v294_v10 = vmul.f32 0.001953125, %v290_v9 }
 0x397   :  { %v1121_v11 = vpop.eup %1120  ;;  %v296_v12 = vadd.f32 1e-05, %v294_v10 }
 0x398   :  { %v298_v13 = vmul.f32 %v1121_v11, %v295_v8  ;;  %vm304_vm5 = vweird.f32 %v1121_v11 }
 0x399   :  { %1122 = vrsqrt.f32 %v296_v12  ;;  %vm305_vm7 = vmor %vm303_vm6, %vm304_vm5  ;;  %vm313_vm8 = vweird.f32 %v296_v12 }
 0x39a   :  { %v299_v14 = vmul.f32 %v1121_v11, %v298_v13 }
 0x39c   :  { %v300_v15 = vmul.f32 0.5, %v299_v14 }
 0x39e   :  { %v301_v16 = vsub.f32 1.5, %v300_v15 }
 0x39f   :  { %v1123_v17 = vpop.eup %1122 }
 0x3a0   :  { %v308_v18 = vmul.f32 %v1123_v17, %v296_v12  ;;  %v302_v19 = vmul.f32 %v1121_v11, %v301_v16  ;;  %vm314_vm9 = vweird.f32 %v1123_v17 }
 0x3a1   :  { %vm315_vm10 = vmor %vm313_vm8, %vm314_vm9 }
 0x3a2   :  { %v309_v21 = vmul.f32 %v1123_v17, %v308_v18  ;;  %v306_v22 = vsel %vm305_vm7, %v1121_v11, %v302_v19 }
 0x3a3   :  { %319 = vperm.xlu1 %1113, %v306_v22  }
 0x3a4   :  { %v310_v23 = vmul.f32 0.5, %v309_v21  ;;  %v1118_v21 = vld [vmem:[%s1681_s10] ss:$0 sm:$0xff] }
 0x3a6   :  { %v311_v25 = vsub.f32 1.5, %v310_v23 }
 0x3a8   :  { %v312_v26 = vmul.f32 %v1123_v17, %v311_v25 }
 0x3aa   :  { %v316_v27 = vsel %vm315_vm10, %v1123_v17, %v312_v26 }
 0x3ab   :  { %324 = vperm.xlu2 %1114, %v316_v27  }
 0x405   :  { %v325_v57 = vpop.permute.xlu2 %324 }
 0x406   :  { %v328_v58 = vmul.f32 %v325_v57, %v1379_v1  ;;  %v333_v1 = vld [vmem:[%s1679_s8] sm:$0xff] }
 0x408   :  { %v332_v60 = vmul.f32 %v330_v59, %v328_v58  ;;  %v1074_v59 = vld [vmem:[%s1684_s13 + $0x68] sm:$0xff] }
 0x409   :  { %633 = vmatpush.msra.mxu1 %v1074_v59 }
 0x40a   :  { %v336_v3 = vadd.f32 %v334_v62, %v332_v60  ;;  %v1073_v62 = vld [vmem:[%s1684_s13 + $0x60] sm:$0xff] }
 0x40b   :  { %634 = vmatpush.msra.mxu1 %v1073_v62 }
 0x40c   :  { %v338_v6 = vrot.slane %v336_v3, 7  ;;  %v344_v7 = vrot.slane %v336_v3, 1 }
 0x415   :  { %v320_v0 = vpop.permute.xlu1 %319 }
 0x416   :  { %v327_v2 = vmul.f32 %v320_v0, %v1374_v61 }
 0x418   :  { %v331_v4 = vmul.f32 %v329_v63, %v327_v2  ;;  %v1072_v63 = vld [vmem:[%s1684_s13 + $0x58] sm:$0xff] }
 0x419   :  { %635 = vmatpush.msra.mxu1 %v1072_v63 }
 0x41a   :  { %v335_v5 = vadd.f32 %v333_v1, %v331_v4 }
 0x41c   :  { %v337_v8 = vrot.slane %v335_v5, 7  ;;  %v343_v9 = vrot.slane %v335_v5, 1  ;;  %1051 = vmatmul.msk.f32.vlgmr.msrb.gmra.mxu0 %vm211_vm3, %v335_v5 }
 0x41e   :  { %v340_v10 = vsel %vm69_vm2, %v338_v6, %v337_v8  ;;  %v345_v11 = vsel %vm86_vm1, %v343_v9, %v344_v7  ;;  %v339_v13 = vsel %vm69_vm2, %v337_v8, %v338_v6  ;;  %v346_v14 = vsel %vm86_vm1, %v344_v7, %v343_v9 }
 0x41f   :  { %v341_v61 = vmul.f32 %v340_v10, %v1344_v32  ;;  %v347_v12 = vmul.f32 %v345_v11, %v1332_v24  ;;  %v342_v15 = vmul.f32 %v339_v13, %v1349_v34  ;;  %v348_v16 = vmul.f32 %v346_v14, %v1337_v28 }
 0x421   :  { %1053 = vmatmul.msk.f32.vlgmr.msrb.gmra.mxu1 %vm211_vm3, %v341_v61  ;;  %1063 = vmatmul.msk.f32.vlgmr.msrb.gmra.mxu2 %vm211_vm3, %v347_v12 }
 0x424   :  { %1052 = vmatmul.msk.f32.gmra.mxu0 %vm211_vm3, %v336_v3 }
 0x429   :  { %1054 = vmatmul.msk.f32.gmra.mxu1 %vm211_vm3, %v342_v15  ;;  %1064 = vmatmul.msk.f32.gmra.mxu2 %vm211_vm3, %v348_v16  ;;  %v1071_v16 = vld [vmem:[%s1684_s13 + $0x50] sm:$0xff] }
 0x42a   :  { %636 = vmatpush.msra.mxu1 %v1071_v16 }
 0x499   :  { %v389_v18 = vpop.f32.mrf.mxu0 }
 0x49e   :  { %v418_v17 = vpop.f32.mrf.mxu1 }
 0x49f   :  { %v419_v19 = vadd.f32 %v418_v17, %v389_v18  ;;  %v1070_v17 = vld [vmem:[%s1684_s13 + $0x48] sm:$0xff]  ;;  %v1069_v18 = vld [vmem:[%s1684_s13 + $0x40] sm:$0xff] }
 0x4a0   :  { %637 = vmatpush.msra.mxu1 %v1070_v17 }
 0x4a1   :  { %v392_v29 = vpop.f32.mrf.mxu0 }
 0x4a2   :  { %638 = vmatpush.msra.mxu1 %v1069_v18 }
 0x4a4   :  { %v456_v22 = vpop.f32.mrf.mxu2 }
 0x4a5   :  { %v462_v23 = vadd.f32 %v456_v22, %v419_v19  ;;  %v607_v19 = vld [vmem:[%s1684_s13 + $0x38] sm:$0xff]  ;;  %v606_v22 = vld [vmem:[%s1684_s13 + $0x30] sm:$0xff] }
 0x4a6   :  { %v421_v26 = vpop.f32.mrf.mxu1  ;;  %660 = vmatpush.msra.mxu2 %v607_v19 }
 0x4a7   :  { %v468_v25 = vadd.f32 %v1118_v21, %v462_v23  ;;  %v422_v30 = vadd.f32 %v421_v26, %v392_v29  ;;  %v1087_v23 = vld [vmem:[%s1684_s13 + $0xb0] sm:$0xff]  ;;  %v1086_v29 = vld [vmem:[%s1684_s13 + $0xa8] sm:$0xff] }
 0x4a8   :  { %661 = vmatpush.msra.mxu2 %v606_v22 }
 0x4a9   :  { %v470_v27 = vsel %vm211_vm3, %v468_v25, 0.0 }
 0x4aa   :  { %471 = vadd.xlane.f32.xlu2 %v470_v27  ;;  %v605_v27 = vld [vmem:[%s1684_s13 + $0x28] sm:$0xff] }
 0x4ab   :  { %662 = vmatpush.msra.mxu2 %v605_v27 }
 0x4ac   :  { %v459_v31 = vpop.f32.mrf.mxu2 }
 0x4ad   :  { %v463_v33 = vadd.f32 %v459_v31, %v422_v30  ;;  %v584_v31 = vld [vmem:[%s1683_s12] sm:$0xff] }
 0x4af   :  { %v469_v35 = vadd.f32 %v1118_v21, %v463_v33  ;;  %v1088_v21 = vld [vmem:[%s1684_s13 + $0xb8] sm:$0xff]  ;;  %v604_v33 = vld [vmem:[%s1684_s13 + $0x20] sm:$0xff] }
 0x4b0   :  { %663 = vmatpush.msra.mxu2 %v604_v33 }
 0x4b1   :  { %v473_v36 = vsel %vm211_vm3, %v469_v35, 0.0 }
 0x4b2   :  { %474 = vadd.xlane.f32.xlu1 %v473_v36 }
 0x51d   :  { %v472_v38 = vpop.xlane.xlu2 %471 }
 0x525   :  { %v475_v37 = vpop.xlane.xlu1 %474 }
 0x526   :  { %490 = vmatpush.msra.mxu3 %v475_v37  ;;  %v603_v37 = vld [vmem:[%s1684_s13 + $0x18] sm:$0xff] }
 0x527   :  { %664 = vmatpush.msra.mxu2 %v603_v37 }
 0x528   :  { %491 = vmatpush.msra.mxu3 %v472_v38  ;;  %v1084_v38 = vld [vmem:[%s1684_s13 + $0x98] sm:$0xff] }
 0x529   :  { %1065 = vmatmul.msk.f32.vlgmr.msra.gmra.mxu3 %vm218_vm4, %v1363_v53 }
 0x52a   :  { %1099 = vmatpush.msrb.mxu3 %v1088_v21 }
 0x52c   :  { %1100 = vmatpush.msrb.mxu3 %v1087_v23 }
 0x52e   :  { %1101 = vmatpush.msrb.mxu3 %v1086_v29 }
 0x531   :  { %1066 = vmatmul.msk.f32.gmra.mxu3 %vm218_vm4, %v1370_v55 }
 0x5ac   :  { %v493_v39 = vpop.f32.mrf.mxu3 }
 0x5ad   :  { %v499_v40 = vmul.f32 0.001953125, %v493_v39 }
 0x5af   :  { %503 = vperm.xlu1 %1113, %v499_v40   ;;  %v602_v40 = vld [vmem:[%s1684_s13 + $0x10] sm:$0xff] }
 0x5b0   :  { %665 = vmatpush.msra.mxu2 %v602_v40 }
 0x5b4   :  { %v496_v41 = vpop.f32.mrf.mxu3 }
 0x5b5   :  { %v500_v42 = vmul.f32 0.001953125, %v496_v41  ;;  %v1083_v41 = vld [vmem:[%s1684_s13 + $0x90] sm:$0xff] }
 0x5b7   :  { %508 = vperm.xlu0 %1112, %v500_v42   ;;  %v601_v42 = vld [vmem:[%s1684_s13 + $0x8] sm:$0xff] }
 0x5b8   :  { %666 = vmatpush.msra.mxu2 %v601_v42 }
 0x621   :  { %v504_v43 = vpop.permute.xlu1 %503 }
 0x622   :  { %v1501_v44 = vsub.f32 %v468_v25, %v504_v43  ;;  %v580_v25 = vld [vmem:[%s1682_s11] sm:$0xff]  ;;  %v1082_v43 = vld [vmem:[%s1684_s13 + $0x88] sm:$0xff] }
 0x624   :  { %v513_v45 = vmul.f32 %v1501_v44, %v1501_v44 }
 0x626   :  { %v515_v46 = vsel %vm211_vm3, %v513_v45, 0.0  ;;  %v1081_v45 = vld [vmem:[%s1684_s13 + $0x80] sm:$0xff] }
 0x627   :  { %516 = vadd.xlane.f32.xlu2 %v515_v46  ;;  %v581_v46 = vld [vmem:[%s1682_s11 + $0x8] sm:$0xff] }
 0x629   :  { %v509_v47 = vpop.permute.xlu0 %508 }
 0x62a   :  { %v1506_v48 = vsub.f32 %v469_v35, %v509_v47  ;;  %v1085_v35 = vld [vmem:[%s1684_s13 + $0xa0] sm:$0xff] }
 0x62b   :  { %1102 = vmatpush.msrb.mxu3 %v1085_v35 }
 0x62c   :  { %v514_v49 = vmul.f32 %v1506_v48, %v1506_v48 }
 0x62d   :  { %1103 = vmatpush.msrb.mxu3 %v1084_v38 }
 0x62e   :  { %v518_v50 = vsel %vm211_vm3, %v514_v49, 0.0 }
 0x62f   :  { %519 = vadd.xlane.f32.xlu0 %v518_v50  ;;  %1104 = vmatpush.msrb.mxu3 %v1083_v41  ;;  %v585_v50 = vld [vmem:[%s1683_s12 + $0x8] sm:$0xff] }
 0x631   :  { %1105 = vmatpush.msrb.mxu3 %v1082_v43 }
 0x633   :  { %1106 = vmatpush.msrb.mxu3 %v1081_v45 }
 0x69a   :  { %v517_v52 = vpop.xlane.xlu2 %516 }
 0x6a2   :  { %v520_v51 = vpop.xlane.xlu0 %519 }
 0x6a3   :  { %535 = vmatpush.msra.mxu0 %v520_v51 }
 0x6a5   :  { %536 = vmatpush.msra.mxu0 %v517_v52 }
 0x6a6   :  { %1067 = vmatmul.msk.f32.vlgmr.msra.gmra.mxu0 %vm218_vm4, %v1363_v53 }
 0x6a7   :  { %698 = vmatpush.msrb.mxu0 %v1088_v21 }
 0x6a9   :  { %699 = vmatpush.msrb.mxu0 %v1087_v23 }
 0x6ab   :  { %700 = vmatpush.msrb.mxu0 %v1086_v29 }
 0x6ad   :  { %701 = vmatpush.msrb.mxu0 %v1085_v35 }
 0x6ae   :  { %1068 = vmatmul.msk.f32.gmra.mxu0 %vm218_vm4, %v1370_v55 }
 0x6af   :  { %702 = vmatpush.msrb.mxu0 %v1084_v38 }
 0x6b1   :  { %703 = vmatpush.msrb.mxu0 %v1083_v41 }
 0x6b3   :  { %704 = vmatpush.msrb.mxu0 %v1082_v43 }
 0x6b5   :  { %705 = vmatpush.msrb.mxu0 %v1081_v45 }
 0x723   :  { %v538_v57 = vpop.f32.mrf.mxu0 }
 0x724   :  { %v544_v58 = vmul.f32 0.001953125, %v538_v57 }
 0x726   :  { %v546_v60 = vadd.f32 1e-05, %v544_v58 }
 0x728   :  { %1124 = vrsqrt.f32 %v546_v60  ;;  %vm554_vm12 = vweird.f32 %v546_v60 }
 0x72b   :  { %v541_v0 = vpop.f32.mrf.mxu0 }
 0x72c   :  { %v545_v2 = vmul.f32 0.001953125, %v541_v0 }
 0x72e   :  { %v1125_v1 = vpop.eup %1124  ;;  %v547_v3 = vadd.f32 1e-05, %v545_v2 }
 0x72f   :  { %v549_v4 = vmul.f32 %v1125_v1, %v546_v60  ;;  %vm555_vm11 = vweird.f32 %v1125_v1 }
 0x730   :  { %1126 = vrsqrt.f32 %v547_v3  ;;  %vm556_vm13 = vmor %vm554_vm12, %vm555_vm11  ;;  %vm564_vm15 = vweird.f32 %v547_v3 }
 0x731   :  { %v550_v5 = vmul.f32 %v1125_v1, %v549_v4 }
 0x733   :  { %v551_v6 = vmul.f32 0.5, %v550_v5 }
 0x735   :  { %v552_v7 = vsub.f32 1.5, %v551_v6 }
 0x736   :  { %v1127_v8 = vpop.eup %1126 }
 0x737   :  { %v559_v9 = vmul.f32 %v1127_v8, %v547_v3  ;;  %v553_v10 = vmul.f32 %v1125_v1, %v552_v7  ;;  %vm565_vm14 = vweird.f32 %v1127_v8 }
 0x738   :  { %vm566_vm5 = vmor %vm564_vm15, %vm565_vm14 }
 0x739   :  { %v560_v11 = vmul.f32 %v1127_v8, %v559_v9  ;;  %v557_v61 = vsel %vm556_vm13, %v1125_v1, %v553_v10 }
 0x73a   :  { %570 = vperm.xlu2 %1114, %v557_v61  }
 0x73b   :  { %v561_v12 = vmul.f32 0.5, %v560_v11 }
 0x73d   :  { %v562_v13 = vsub.f32 1.5, %v561_v12 }
 0x73f   :  { %v563_v14 = vmul.f32 %v1127_v8, %v562_v13 }
 0x741   :  { %v567_v15 = vsel %vm566_vm5, %v1127_v8, %v563_v14 }
 0x742   :  { %575 = vperm.xlu1 %1113, %v567_v15  }
 0x794   :  { %v571_v26 = vpop.permute.xlu2 %570 }
 0x795   :  { %v578_v30 = vmul.f32 %v571_v26, %v1501_v44  ;;  %v600_v44 = vld [vmem:[%s1684_s13] sm:$0xff] }
 0x796   :  { %667 = vmatpush.msra.mxu2 %v600_v44 }
 0x797   :  { %v582_v36 = vmul.f32 %v580_v25, %v578_v30 }
 0x799   :  { %v586_v39 = vadd.f32 %v584_v31, %v582_v36 }
 0x79b   :  { %1077 = vmatmul.msk.f32.vlgmr.msra.gmra.mxu1 %vm211_vm3, %v586_v39  ;;  %v588_v54 = vrot.slane %v586_v39, 7  ;;  %v594_v56 = vrot.slane %v586_v39, 1 }
 0x7b4   :  { %v576_v47 = vpop.permute.xlu1 %575 }
 0x7b5   :  { %v579_v49 = vmul.f32 %v576_v47, %v1506_v48 }
 0x7b7   :  { %v583_v51 = vmul.f32 %v581_v46, %v579_v49 }
 0x7b9   :  { %v587_v52 = vadd.f32 %v585_v50, %v583_v51 }
 0x7bb   :  { %v589_v57 = vrot.slane %v587_v52, 7  ;;  %v595_v58 = vrot.slane %v587_v52, 1  ;;  %1078 = vmatmul.msk.f32.gmra.mxu1 %vm211_vm3, %v587_v52 }
 0x7bd   :  { %v591_v59 = vsel %vm69_vm2, %v589_v57, %v588_v54  ;;  %v596_v60 = vsel %vm86_vm1, %v594_v56, %v595_v58  ;;  %v597_v48 = vsel %vm86_vm1, %v595_v58, %v594_v56  ;;  %v590_v2 = vsel %vm69_vm2, %v588_v54, %v589_v57  ;;  %v833_v58 = vld [vmem:[%s1686_s15 + $0x8] sm:$0xff] }
 0x7be   :  { %v592_v62 = vmul.f32 %v591_v59, %v1344_v32  ;;  %v598_v63 = vmul.f32 %v596_v60, %v1332_v24  ;;  %v599_v0 = vmul.f32 %v597_v48, %v1337_v28  ;;  %v593_v1 = vmul.f32 %v590_v2, %v1349_v34  ;;  %v1119_v24 = vld [vmem:[%s1685_s14] ss:$0 sm:$0xff]  ;;  %v837_v60 = vld [vmem:[%s1687_s16 + $0x8] sm:$0xff] }
 0x7bf   :  { %vm721_vm1 = vcmask 15360   ;;  %v832_v48 = vld [vmem:[%s1686_s15] sm:$0xff] }
 0x7c0   :  { %1079 = vmatmul.msk.f32.vlgmr.msra.gmra.mxu2 %vm211_vm3, %v592_v62  ;;  %1089 = vmatmul.msk.f32.vlgmr.msrb.gmra.mxu0 %vm211_vm3, %v598_v63 }
 0x7c1   :  { %1090 = vmatmul.msk.f32.vlgmr.msrb.gmra.mxu3 %vm211_vm3, %v599_v0  ;;  %v836_v0 = vld [vmem:[%s1687_s16] sm:$0xff] }
 0x7c8   :  { %1080 = vmatmul.msk.f32.gmra.mxu2 %vm211_vm3, %v593_v1 }
 0x818   :  { %v640_v3 = vpop.f32.mrf.mxu1 }
 0x838   :  { %v643_v8 = vpop.f32.mrf.mxu1 }
 0x83d   :  { %v707_v28 = vpop.f32.mrf.mxu0 }
 0x843   :  { %v669_v4 = vpop.f32.mrf.mxu2 }
 0x844   :  { %v670_v32 = vadd.f32 %v669_v4, %v640_v3  ;;  %v710_v34 = vpop.f32.mrf.mxu3 }
 0x846   :  { %v713_v5 = vadd.f32 %v707_v28, %v670_v32 }
 0x848   :  { %v719_v6 = vadd.f32 %v1119_v24, %v713_v5 }
 0x84a   :  { %v722_v7 = vsel %vm721_vm1, %v719_v6, 0.0 }
 0x84b   :  { %723 = vadd.xlane.f32.xlu2 %v722_v7  ;;  %v672_v20 = vpop.f32.mrf.mxu2 }
 0x84c   :  { %v673_v9 = vadd.f32 %v672_v20, %v643_v8 }
 0x84e   :  { %v714_v10 = vadd.f32 %v710_v34, %v673_v9 }
 0x850   :  { %v720_v11 = vadd.f32 %v1119_v24, %v714_v10 }
 0x852   :  { %v725_v61 = vsel %vm721_vm1, %v720_v11, 0.0 }
 0x853   :  { %726 = vadd.xlane.f32.xlu1 %v725_v61 }
 0x8be   :  { %v724_v13 = vpop.xlane.xlu2 %723 }
 0x8c6   :  { %v727_v12 = vpop.xlane.xlu1 %726 }
 0x8c7   :  { %742 = vmatpush.msra.mxu0 %v727_v12 }
 0x8c9   :  { %743 = vmatpush.msra.mxu0 %v724_v13  ;;  %v1177_v13 = vmov 1  }
 0x8ca   :  { %1091 = vmatmul.msk.f32.vlgmr.msra.gmra.mxu0 %vm218_vm4, %v1363_v53 }
 0x8d2   :  { %1092 = vmatmul.msk.f32.gmra.mxu0 %vm218_vm4, %v1370_v55 }
 0x947   :  { %v745_v14 = vpop.f32.mrf.mxu0 }
 0x948   :  { %v751_v17 = vmul.f32 0.0625, %v745_v14 }
 0x94f   :  { %v748_v15 = vpop.f32.mrf.mxu0 }
 0x950   :  { %v752_v16 = vmul.f32 0.0625, %v748_v15 }
 0x952   :  { %760 = vperm.xlu0 %1112, %v752_v16  }
 0x95a   :  { %755 = vperm.xlu0 %1112, %v751_v17  }
 0x962   :  { %1116 = vset.pattern.permute.xlu0 %v1177_v13 }
 0x9c4   :  { %v761_v18 = vpop.permute.xlu0 %760 }
 0x9c5   :  { %v764_v19 = vsub.f32 %v720_v11, %v761_v18 }
 0x9c7   :  { %v766_v21 = vmul.f32 %v764_v19, %v764_v19 }
 0x9c9   :  { %v770_v22 = vsel %vm721_vm1, %v766_v21, 0.0 }
 0x9ca   :  { %771 = vadd.xlane.f32.xlu1 %v770_v22 }
 0x9cc   :  { %v756_v23 = vpop.permute.xlu0 %755 }
 0x9cd   :  { %v763_v25 = vsub.f32 %v719_v6, %v756_v23 }
 0x9cf   :  { %v765_v26 = vmul.f32 %v763_v25, %v763_v25 }
 0x9d1   :  { %v767_v27 = vsel %vm721_vm1, %v765_v26, 0.0 }
 0x9d2   :  { %768 = vadd.xlane.f32.xlu0 %v767_v27 }
 0xa3d   :  { %v772_v29 = vpop.xlane.xlu1 %771 }
 0xa3e   :  { %787 = vmatpush.msrb.mxu1 %v772_v29 }
 0xa45   :  { %v769_v30 = vpop.xlane.xlu0 %768 }
 0xa46   :  { %788 = vmatpush.msrb.mxu1 %v769_v30 }
 0xa47   :  { %1093 = vmatmul.msk.f32.vlgmr.msrb.gmra.mxu1 %vm218_vm4, %v1363_v53 }
 0xa4f   :  { %1094 = vmatmul.msk.f32.gmra.mxu1 %vm218_vm4, %v1370_v55 }
 0xac4   :  { %v790_v31 = vpop.f32.mrf.mxu1 }
 0xac5   :  { %v796_v33 = vmul.f32 0.0625, %v790_v31 }
 0xac7   :  { %v798_v35 = vadd.f32 1e-05, %v796_v33 }
 0xac9   :  { %1128 = vrsqrt.f32 %v798_v35  ;;  %vm806_vm3 = vweird.f32 %v798_v35 }
 0xacc   :  { %v793_v36 = vpop.f32.mrf.mxu1 }
 0xacd   :  { %v797_v37 = vmul.f32 0.0625, %v793_v36 }
 0xacf   :  { %v1129_v38 = vpop.eup %1128  ;;  %v799_v39 = vadd.f32 1e-05, %v797_v37 }
 0xad0   :  { %v801_v40 = vmul.f32 %v1129_v38, %v798_v35  ;;  %vm807_vm2 = vweird.f32 %v1129_v38 }
 0xad1   :  { %1130 = vrsqrt.f32 %v799_v39  ;;  %vm808_vm6 = vmor %vm806_vm3, %vm807_vm2  ;;  %vm816_vm7 = vweird.f32 %v799_v39 }
 0xad2   :  { %v802_v41 = vmul.f32 %v1129_v38, %v801_v40 }
 0xad4   :  { %v803_v42 = vmul.f32 0.5, %v802_v41 }
 0xad6   :  { %v804_v43 = vsub.f32 1.5, %v803_v42 }
 0xad7   :  { %v1131_v44 = vpop.eup %1130 }
 0xad8   :  { %v811_v45 = vmul.f32 %v1131_v44, %v799_v39  ;;  %v805_v46 = vmul.f32 %v1129_v38, %v804_v43  ;;  %vm817_vm8 = vweird.f32 %v1131_v44 }
 0xad9   :  { %vm818_vm9 = vmor %vm816_vm7, %vm817_vm8 }
 0xada   :  { %v812_v47 = vmul.f32 %v1131_v44, %v811_v45  ;;  %v809_v49 = vsel %vm808_vm6, %v1129_v38, %v805_v46 }
 0xadb   :  { %822 = vperm.xlu1 %1113, %v809_v49  }
 0xadc   :  { %v813_v50 = vmul.f32 0.5, %v812_v47 }
 0xade   :  { %v814_v51 = vsub.f32 1.5, %v813_v50 }
 0xae0   :  { %v815_v52 = vmul.f32 %v1131_v44, %v814_v51 }
 0xae2   :  { %v819_v54 = vsel %vm818_vm9, %v1131_v44, %v815_v52 }
 0xae3   :  { %827 = vperm.xlu2 %1114, %v819_v54  }
 0xaeb   :  { %1115 = vset.pattern.permute.xlu2 %v1177_v13 }
 0xb3d   :  { %v828_v56 = vpop.permute.xlu2 %827 }
 0xb3e   :  { %v831_v57 = vmul.f32 %v828_v56, %v764_v19 }
 0xb40   :  { %v835_v59 = vmul.f32 %v833_v58, %v831_v57 }
 0xb42   :  { %v839_v2 = vadd.f32 %v837_v60, %v835_v59 }
 0xb44   :  { %v841_v4 = vsel %vm721_vm1, %v839_v2, -inf }
 0xb4d   :  { %v823_v62 = vpop.permute.xlu1 %822 }
 0xb4e   :  { %v830_v63 = vmul.f32 %v823_v62, %v763_v25 }
 0xb50   :  { %v834_v1 = vmul.f32 %v832_v48, %v830_v63 }
 0xb52   :  { %v838_v3 = vadd.f32 %v836_v0, %v834_v1 }
 0xb54   :  { %v840_v32 = vsel %vm721_vm1, %v838_v3, -inf }
 0xb55   :  { %v842_v24 = vmax.f32 %v840_v32, %v841_v4 }
 0xb57   :  { %v843_v28 = vrot.slane %v842_v24, 4 }
 0xb59   :  { %v844_v5 = vmax.f32 %v842_v24, %v843_v28 }
 0xb5b   :  { %v845_v6 = vrot.slane %v844_v5, 2 }
 0xb5d   :  { %v846_v7 = vmax.f32 %v844_v5, %v845_v6  ;;  %v1148_v6 = vld [vmem:[%s1693_s25 + $0x8] sm:$0xff] }
 0xb5f   :  { %v847_v8 = vrot.slane %v846_v7, 1 }
 0xb61   :  { %v848_v20 = vmax.f32 %v846_v7, %v847_v8 }
 0xb63   :  { %v849_v9 = vsub.f32 %v838_v3, %v848_v20  ;;  %v850_v34 = vsub.f32 %v839_v2, %v848_v20  ;;  %v1149_v20 = vld [vmem:[%s1693_s25] sm:$0xff]  ;;  %s1178_s25 = smov [#allocation2]  }
 0xb64   :  { %s1011_s10 = sshll.u32 %s1178_s25, 4  ;;  %s1012_s10 = int_to_ptr.vmem [resolvable:$true] %s1011_s10 }
 0xb65   :  { %v853_v10 = vmul.f32 1.442695, %v850_v34  ;;  %v851_v11 = vmul.f32 1.442695, %v849_v9  ;;  %v946_v34 = vld [vmem:[%s1694_s2] sm:$0xff] }
 0xb67   :  { %1132 = vpow2.f32 %v853_v10 }
 0xb68   :  { %1134 = vpow2.f32 %v851_v11 }
 0xb6d   :  { %v1133_v61 = vpop.eup %1132 }
 0xb6e   :  { %869 = vmatpush.msrb.mxu2 %v1133_v61  ;;  %v1135_v12 = vpop.eup %1134 }
 0xb70   :  { %870 = vmatpush.msrb.mxu2 %v1135_v12 }
 0xb71   :  { %1095 = vmatmul.msk.f32.vlgmr.msrb.gmra.mxu2 %vm218_vm4, %v1363_v53 }
 0xb79   :  { %1096 = vmatmul.msk.f32.gmra.mxu2 %vm218_vm4, %v1370_v55 }
 0xbf4   :  { %v872_v14 = vpop.f32.mrf.mxu2 }
 0xbf5   :  { %1136 = vrcp.f32 %v872_v14  ;;  %v889_v19 = vand.u32 2147483648, %v872_v14  ;;  %v887_v22 = vand.u32 2147483647, %v872_v14  ;;  %vm883_vm11 = vweird.f32 %v872_v14 }
 0xbf7   :  { %v890_v25 = vor.u32 1.1754944e-38, %v889_v19  ;;  %vm888_vm13 = vcmp.eq.f32.partialorder %v887_v22, 8.507059e+37 }
 0xbfb   :  { %v1137_v15 = vpop.eup %1136 }
 0xbfc   :  { %v879_v16 = vmul.f32 %v1137_v15, %v872_v14  ;;  %v875_v17 = vpop.f32.mrf.mxu2  ;;  %vm884_vm10 = vweird.f32 %v1137_v15 }
 0xbfd   :  { %1138 = vrcp.f32 %v875_v17  ;;  %vm885_vm12 = vmor %vm883_vm11, %vm884_vm10  ;;  %v904_v31 = vand.u32 2147483648, %v875_v17  ;;  %v902_v35 = vand.u32 2147483647, %v875_v17  ;;  %vm898_vm15 = vweird.f32 %v875_v17 }
 0xbfe   :  { %v880_v18 = vsub.f32 1.0, %v879_v16 }
 0xbff   :  { %v905_v39 = vor.u32 1.1754944e-38, %v904_v31  ;;  %vm903_vm1 = vcmp.eq.f32.partialorder %v902_v35, 8.507059e+37 }
 0xc00   :  { %v881_v21 = vmul.f32 %v1137_v15, %v880_v18 }
 0xc02   :  { %v882_v23 = vadd.f32 %v1137_v15, %v881_v21 }
 0xc03   :  { %v1139_v53 = vpop.eup %1138 }
 0xc04   :  { %v894_v55 = vmul.f32 %v1139_v53, %v875_v17  ;;  %v886_v26 = vsel %vm885_vm12, %v1137_v15, %v882_v23  ;;  %vm899_vm14 = vweird.f32 %v1139_v53 }
 0xc05   :  { %v891_v27 = vsel %vm888_vm13, %v890_v25, %v886_v26  ;;  %vm900_vm5 = vmor %vm898_vm15, %vm899_vm14 }
 0xc06   :  { %v895_v29 = vsub.f32 1.0, %v894_v55  ;;  %v892_v30 = vmul.f32 %v1135_v12, %v891_v27  ;;  %v947_v12 = vld [vmem:[%s1694_s2 + $0x8] sm:$0xff] }
 0xc08   :  { %v896_v33 = vmul.f32 %v1139_v53, %v895_v29  ;;  %v908_v36 = vmul.f32 0.8, %v892_v30 }
 0xc0a   :  { %v897_v37 = vadd.f32 %v1139_v53, %v896_v33  ;;  %v910_v38 = vmul.f32 2.0, %v908_v36 }
 0xc0c   :  { %v901_v40 = vsel %vm900_vm5, %v1139_v53, %v897_v37  ;;  %v912_v41 = vmul.f32 %v910_v38, %v908_v36 }
 0xc0d   :  { %v906_v42 = vsel %vm903_vm1, %v905_v39, %v901_v40 }
 0xc0e   :  { %v907_v43 = vmul.f32 %v1133_v61, %v906_v42  ;;  %v914_v44 = vadd.f32 1e-05, %v912_v41 }
 0xc10   :  { %971 = vperm.xlu2 %1115, %v907_v43   ;;  %v909_v45 = vmul.f32 0.8, %v907_v43  ;;  %1140 = vrcp.f32 %v914_v44  ;;  %v927_v54 = vand.u32 2147483648, %v914_v44  ;;  %v925_v57 = vand.u32 2147483647, %v914_v44 }
 0xc11   :  { %vm921_vm3 = vweird.f32 %v914_v44 }
 0xc12   :  { %v911_v46 = vmul.f32 2.0, %v909_v45  ;;  %v928_v60 = vor.u32 1.1754944e-38, %v927_v54  ;;  %vm926_vm7 = vcmp.eq.f32.partialorder %v925_v57, 8.507059e+37 }
 0xc14   :  { %v913_v47 = vmul.f32 %v911_v46, %v909_v45 }
 0xc16   :  { %v1141_v49 = vpop.eup %1140  ;;  %v915_v50 = vadd.f32 1e-05, %v913_v47 }
 0xc17   :  { %v917_v51 = vmul.f32 %v1141_v49, %v914_v44  ;;  %vm922_vm2 = vweird.f32 %v1141_v49 }
 0xc18   :  { %1142 = vrcp.f32 %v915_v50  ;;  %966 = vperm.xlu2 %1115, %v892_v30   ;;  %vm923_vm6 = vmor %vm921_vm3, %vm922_vm2  ;;  %v942_v2 = vand.u32 2147483648, %v915_v50  ;;  %v940_v3 = vand.u32 2147483647, %v915_v50  ;;  %vm936_vm9 = vweird.f32 %v915_v50 }
 0xc19   :  { %v918_v52 = vsub.f32 1.0, %v917_v51 }
 0xc1a   :  { %v943_v32 = vor.u32 1.1754944e-38, %v942_v2  ;;  %vm941_vm11 = vcmp.eq.f32.partialorder %v940_v3, 8.507059e+37 }
 0xc1b   :  { %v919_v56 = vmul.f32 %v1141_v49, %v918_v52 }
 0xc1d   :  { %v920_v58 = vadd.f32 %v1141_v49, %v919_v56 }
 0xc1e   :  { %v1143_v59 = vpop.eup %1142 }
 0xc1f   :  { %v924_v48 = vsel %vm923_vm6, %v1141_v49, %v920_v58  ;;  %v932_v62 = vmul.f32 %v1143_v59, %v915_v50  ;;  %vm937_vm8 = vweird.f32 %v1143_v59 }
 0xc20   :  { %v929_v63 = vsel %vm926_vm7, %v928_v60, %v924_v48  ;;  %vm938_vm10 = vmor %vm936_vm9, %vm937_vm8 }
 0xc21   :  { %950 = vperm.xlu1 %1113, %v929_v63   ;;  %v933_v0 = vsub.f32 1.0, %v932_v62 }
 0xc23   :  { %v934_v1 = vmul.f32 %v1143_v59, %v933_v0 }
 0xc25   :  { %v935_v4 = vadd.f32 %v1143_v59, %v934_v1 }
 0xc27   :  { %v939_v24 = vsel %vm938_vm10, %v1143_v59, %v935_v4 }
 0xc28   :  { %v944_v28 = vsel %vm941_vm11, %v943_v32, %v939_v24 }
 0xc29   :  { %955 = vperm.xlu1 %1113, %v944_v28  }
 0xc6a   :  { %v972_v5 = vpop.permute.xlu2 %971 }
 0xc6b   :  { %v975_v7 = vmul.f32 %v1148_v6, %v972_v5 }
 0xc6d   :  { %996 = vmatpush.msra.mxu3 %v975_v7 }
 0xc72   :  { %v967_v8 = vpop.permute.xlu2 %966 }
 0xc73   :  { %v974_v9 = vmul.f32 %v1149_v20, %v967_v8 }
 0xc75   :  { %997 = vmatpush.msra.mxu3 %v974_v9 }
 0xc93   :  { %v951_v10 = vpop.permute.xlu1 %950 }
 0xc94   :  { %v958_v11 = vmul.f32 %v951_v10, %v946_v34 }
 0xc96   :  { %v960_v61 = vmul.f32 1.442695, %v958_v11 }
 0xc98   :  { %1144 = vpow2.f32 %v960_v61 }
 0xc9b   :  { %v956_v13 = vpop.permute.xlu1 %955 }
 0xc9c   :  { %v959_v14 = vmul.f32 %v956_v13, %v947_v12 }
 0xc9e   :  { %v1145_v15 = vpop.eup %1144  ;;  %v962_v16 = vmul.f32 1.442695, %v959_v14 }
 0xc9f   :  { %1097 = vmatmul.msk.f32.vlgmr.msra.gmra.mxu3 %vm218_vm4, %v1145_v15 }
 0xca0   :  { %1146 = vpow2.f32 %v962_v16 }
 0xca6   :  { %v1147_v17 = vpop.eup %1146 }
 0xca7   :  { %1098 = vmatmul.msk.f32.gmra.mxu3 %vm218_vm4, %v1147_v17 }
 0xd22   :  { %v999_v18 = vpop.f32.mrf.mxu3 }
 0xd23   :  { %1005 = vst.msk [vmem:[#allocation2] sm:$0xff] %vm110_vm0, %v999_v18 }
 0xd2a   :  { %v1002_v19 = vpop.f32.mrf.mxu3 }
 0xd2b   :  { %1006 = vst.msk [vmem:[#allocation2 + $0x8] sm:$0xff] %vm110_vm0, %v1002_v19 }
 0xd2c   :  { %1019 = dma.vmem_to_hbm [thread:$0]  %s1012_s10, 256, %s1014_s4, [#allocation3], %s1179_s30, %s1179_s30, %s1180_s18  }
 0xd2d   :  { %1174 = dma.done.wait [#allocation3], 256  }
 0xd2e   :  { %1175 = vsyncadd [#allocation3], 4294967040 }
 0xd2f   :  { %1024 = vsyncpa [#allocation3], 1 }

</bundles_post_ra>
